<compile_context>
chip_gen: v5e
topology: v5e:2x2
jax: 0.10.0
libtpu: 0.0.40
codegen_flags: <defaults>
</compile_context>

<pallas_src>
import functools

import numpy as np
import jax
import jax.numpy as jnp
from jax.experimental import pallas as pl
from jax.experimental.pallas import tpu as pltpu

LEAKY_SLOPE = 0.2


def _num_tensorcores():
    """2 on chips whose TensorCores can split a 'parallel' grid axis
    (v7x, v4/v5p megacore), else 1. Falls back to 1 on any query failure."""
    try:
        kind = jax.devices()[0].device_kind.lower()
    except Exception:
        return 1
    return 2 if any(t in kind for t in ('7', 'v4', 'v5p')) else 1


# --------------------------------------------------------------------------
# Pallas kernel 1a: O = act(A @ W + b)   (A:(M,K), W:(K,N)) -> (M,N)
# --------------------------------------------------------------------------
def _matmul_bias_act_kernel(a_ref, w_ref, b_ref, o_ref, *, apply_act):
    y = jnp.dot(a_ref[...], w_ref[...], preferred_element_type=jnp.float32)
    y = y + b_ref[...]
    if apply_act:
        y = jnp.where(y >= 0.0, y, LEAKY_SLOPE * y)
    o_ref[...] = y.astype(o_ref.dtype)


def matmul_bias_act(a, w, bias_row, *, apply_act, out_dtype, n_m_tiles):
    M, K = a.shape
    K2, N = w.shape
    assert K == K2 and M % n_m_tiles == 0
    tm = M // n_m_tiles
    cost = pl.CostEstimate(
        flops=2 * M * K * N, transcendentals=0,
        bytes_accessed=int(M * K * a.dtype.itemsize + K * N * w.dtype.itemsize
                           + N * 4 + M * N * np.dtype(out_dtype).itemsize))
    return pl.pallas_call(
        functools.partial(_matmul_bias_act_kernel, apply_act=apply_act),
        out_shape=jax.ShapeDtypeStruct((M, N), out_dtype),
        grid_spec=pltpu.PrefetchScalarGridSpec(
            num_scalar_prefetch=0,
            grid=(n_m_tiles,),
            in_specs=[
                pl.BlockSpec((tm, K), lambda i: (i, 0)),   # A tile (full K)
                pl.BlockSpec((K, N), lambda i: (0, 0)),    # whole W
                pl.BlockSpec((1, N), lambda i: (0, 0)),    # bias row
            ],
            out_specs=pl.BlockSpec((tm, N), lambda i: (i, 0)),
        ),
        compiler_params=pltpu.CompilerParams(
            dimension_semantics=("parallel",)),
        cost_estimate=cost,
    )(a, w, bias_row)


# --------------------------------------------------------------------------
# Pallas kernel 1b: transposed product O^T = act(W^T @ A^T + b) for layers
# with Cout << 128: puts the big M axis on the 128-lane dimension so loads
# and stores are lane-dense (unmasked vld/vst).
# --------------------------------------------------------------------------
def _matmul_bias_act_t_kernel(wt_ref, at_ref, b_ref, o_ref, *, apply_act):
    y = jnp.dot(wt_ref[...], at_ref[...], preferred_element_type=jnp.float32)
    y = y + b_ref[...]                         # (N,1) broadcasts over lanes
    if apply_act:
        y = jnp.where(y >= 0.0, y, LEAKY_SLOPE * y)
    o_ref[...] = y.astype(o_ref.dtype)


def matmul_bias_act_t(wt, at, bias_col, *, apply_act, out_dtype, n_m_tiles):
    N, K = wt.shape
    K2, M = at.shape
    assert K == K2 and M % n_m_tiles == 0
    tm = M // n_m_tiles
    assert n_m_tiles == 1 or tm % 128 == 0
    cost = pl.CostEstimate(
        flops=2 * M * K * N, transcendentals=0,
        bytes_accessed=int(M * K * at.dtype.itemsize + K * N * wt.dtype.itemsize
                           + N * 4 + M * N * np.dtype(out_dtype).itemsize))
    return pl.pallas_call(
        functools.partial(_matmul_bias_act_t_kernel, apply_act=apply_act),
        out_shape=jax.ShapeDtypeStruct((N, M), out_dtype),
        grid_spec=pltpu.PrefetchScalarGridSpec(
            num_scalar_prefetch=0,
            grid=(n_m_tiles,),
            in_specs=[
                pl.BlockSpec((N, K), lambda i: (0, 0)),    # whole W^T
                pl.BlockSpec((K, tm), lambda i: (0, i)),   # A^T tile (full K)
                pl.BlockSpec((N, 1), lambda i: (0, 0)),    # bias column
            ],
            out_specs=pl.BlockSpec((N, tm), lambda i: (0, i)),
        ),
        compiler_params=pltpu.CompilerParams(
            dimension_semantics=("parallel",)),
        cost_estimate=cost,
    )(wt, at, bias_col)


# --------------------------------------------------------------------------
# Reflect-pad-1 im2col (XLA glue, fuses under jit with neighbouring kernels).
# --------------------------------------------------------------------------
def _im2col(x_nhwc, kh, kw, stride):
    B, H, W, C = x_nhwc.shape
    xp = jnp.pad(x_nhwc, ((0, 0), (1, 1), (1, 1), (0, 0)), mode='reflect')
    Ho = (H + 2 - kh) // stride + 1
    Wo = (W + 2 - kw) // stride + 1
    cols = []
    for di in range(kh):
        for dj in range(kw):
            cols.append(xp[:, di:di + stride * (Ho - 1) + 1:stride,
                           dj:dj + stride * (Wo - 1) + 1:stride, :])
    return jnp.concatenate(cols, axis=-1), Ho, Wo


def _conv_layer(x_nhwc, arrs, lcfg):
    patches, ho, wo = _im2col(x_nhwc, 4, 4, lcfg['stride'])
    B = x_nhwc.shape[0]
    K = patches.shape[-1]
    a = patches.reshape(B * ho * wo, K)
    if lcfg['transposed']:
        y = matmul_bias_act_t(arrs['w'], a.T, arrs['b'], apply_act=True,
                              out_dtype=jnp.bfloat16,
                              n_m_tiles=lcfg['n_m_tiles']).T
    else:
        y = matmul_bias_act(a, arrs['w'], arrs['b'], apply_act=True,
                            out_dtype=jnp.bfloat16,
                            n_m_tiles=lcfg['n_m_tiles'])
    return y.reshape(B, ho, wo, lcfg['cout'])


# --------------------------------------------------------------------------
# Pallas kernel 2: fused tail = final stride-1 conv + CAM attention head +
# 1x1 conv (gap/gmp scaling folded into the weight) + heat map + classifier
# (reflect-pad 4x4 conv folded into per-position channel weights gt).
# --------------------------------------------------------------------------
def _tail_kernel(p4_ref, w4_ref, b4_ref, wgap_ref, wgmp_ref, wp_ref, bc_ref,
                 gt_ref, bsum_ref, cam_ref, heat_ref, cls_ref):
    bhw = p4_ref.shape[0]
    b_sz = bsum_ref.shape[0]
    hw = bhw // b_sz
    n_out = cls_ref.shape[1]

    # final stride-1 down conv (reflect pad already folded into the patches)
    x = jnp.dot(p4_ref[...], w4_ref[...], preferred_element_type=jnp.float32)
    x = x + b4_ref[...]
    x = jnp.where(x >= 0.0, x, LEAKY_SLOPE * x)                      # (BHW,C) f32

    bsum = bsum_ref[...]                                             # (B,BHW)

    # CAM logits: gap via one MXU dot, gmp via masked sublane max.
    gap = jnp.dot(bsum, x, preferred_element_type=jnp.float32) * (1.0 / hw)
    rows = jax.lax.broadcasted_iota(jnp.int32, (bhw, 1), 0)
    gmps = []
    for b in range(b_sz):
        in_b = jnp.logical_and(rows >= b * hw, rows < (b + 1) * hw)
        gmps.append(jnp.max(jnp.where(in_b, x, jnp.float32(-1e30)),
                            axis=0, keepdims=True))
    gmp = jnp.concatenate(gmps, axis=0)                              # (B,C)
    gap_logit = jnp.sum(gap * wgap_ref[...], axis=-1, keepdims=True)
    gmp_logit = jnp.sum(gmp * wgmp_ref[...], axis=-1, keepdims=True)
    cam_ref[...] = jnp.concatenate([gap_logit, gmp_logit], axis=1)   # (B,2)

    # 1x1 attention conv with the gap/gmp channel scaling folded into wp
    y = jnp.dot(x.astype(jnp.bfloat16), wp_ref[...],
                preferred_element_type=jnp.float32)
    y = y + bc_ref[...]
    y = jnp.where(y >= 0.0, y, LEAKY_SLOPE * y)                      # (BHW,C)

    heat_ref[...] = jnp.sum(y, axis=-1, keepdims=True)               # (BHW,1)

    # classifier conv folded into per-output-position channel weights gt;
    # one (BHW,P) contraction, one bsum dot, one full-width store.
    cols = []
    for p in range(n_out):
        cols.append(jnp.sum(y * gt_ref[p], axis=-1, keepdims=True))  # (BHW,1)
    z = jnp.concatenate(cols, axis=1)                                # (BHW,P)
    cls_ref[...] = jnp.dot(bsum, z, preferred_element_type=jnp.float32)


def _tail_call(p4, arrays):
    bhw, k4 = p4.shape
    c = arrays['w4'].shape[1]
    b_sz = arrays['bsum'].shape[0]
    n_out = arrays['gt'].shape[0]
    vmem = pl.BlockSpec(memory_space=pltpu.MemorySpace.VMEM)
    cost = pl.CostEstimate(
        flops=int(2 * bhw * k4 * c + 2 * b_sz * bhw * c + 2 * bhw * c * c
                  + 2 * bhw * c * n_out + 2 * b_sz * bhw * n_out),
        transcendentals=0,
        bytes_accessed=int(bhw * k4 * 2 + k4 * c * 2 + c * c * 2
                           + n_out * bhw * c * 4 + b_sz * bhw * 4 + 6 * c * 4
                           + (b_sz * 2 + bhw + b_sz * n_out) * 4))
    return pl.pallas_call(
        _tail_kernel,
        out_shape=(jax.ShapeDtypeStruct((b_sz, 2), jnp.float32),
                   jax.ShapeDtypeStruct((bhw, 1), jnp.float32),
                   jax.ShapeDtypeStruct((b_sz, n_out), jnp.float32)),
        in_specs=[vmem] * 9,
        out_specs=(vmem, vmem, vmem),
        cost_estimate=cost,
    )(p4, arrays['w4'], arrays['b4'], arrays['w_gap'], arrays['w_gmp'],
      arrays['wprime'], arrays['bconv'], arrays['gt'], arrays['bsum'])


# --------------------------------------------------------------------------
# One-time parameter preprocessing (hoisted out of the per-forward trace).
# --------------------------------------------------------------------------
def prepare_params(params, input_shape):
    B, Cin, H, W = input_shape
    down = params['down']
    n_layers = len(down)
    strides = [2] * (n_layers - 1) + [1]
    ncores = _num_tensorcores()

    layer_arrays, layer_cfg = [], []
    h, w, cin = H, W, Cin
    for li in range(n_layers - 1):                 # stride-2 stack
        wconv, b = down[li]
        cout, _, kh, kw = wconv.shape
        s = strides[li]
        ho = (h + 2 - kh) // s + 1
        wo = (w + 2 - kw) // s + 1
        M, K, N = B * ho * wo, kh * kw * cin, cout
        wmat = jnp.transpose(wconv, (2, 3, 1, 0)).reshape(K, N)
        transposed = (N < 128) and (M >= 512)
        n_m_tiles = 2 if (ncores == 2 and M >= 512 and M % 256 == 0) else 1
        if transposed:
            arrs = {'w': jnp.asarray(wmat.T, jnp.bfloat16),
                    'b': b.reshape(N, 1).astype(jnp.float32)}
        else:
            arrs = {'w': jnp.asarray(wmat, jnp.bfloat16),
                    'b': b.reshape(1, N).astype(jnp.float32)}
        layer_arrays.append(arrs)
        layer_cfg.append({'stride': s, 'transposed': transposed,
                          'n_m_tiles': n_m_tiles, 'cout': N})
        h, w, cin = ho, wo, cout

    # final stride-1 conv (fused into the tail kernel)
    w4conv, b4 = down[-1]
    C, _, kh, kw = w4conv.shape                    # C = embed_dim
    hf = (h + 2 - kh) + 1
    wf = (w + 2 - kw) + 1
    K4 = kh * kw * cin
    w4 = jnp.asarray(jnp.transpose(w4conv, (2, 3, 1, 0)).reshape(K4, C),
                     jnp.bfloat16)
    b4r = b4.reshape(1, C).astype(jnp.float32)
    HW = hf * wf

    # fold gap/gmp channel scaling into the 1x1 conv weight
    wc = params['w_1x1'].reshape(C, 2 * C)
    wprime = (params['w_gap'][0][:, None] * wc[:, :C].T
              + params['w_gmp'][0][:, None] * wc[:, C:].T)           # (C, C)
    wprime = jnp.asarray(wprime, jnp.bfloat16)
    bconv = params['b_1x1'].reshape(1, C).astype(jnp.float32)

    # fold reflect pad + 4x4 classifier conv into per-position channel weights
    w_cls = params['w_cls']
    kch, kcw = int(w_cls.shape[2]), int(w_cls.shape[3])
    assert kch == 4 and kcw == 4 and hf >= 2 and wf >= 2, \
        "classifier fold assumes a 4x4 kernel, pad=1 and a >=2x2 feature map"
    ho_c, wo_c = hf + 2 - kch + 1, wf + 2 - kcw + 1
    n_out = ho_c * wo_c
    reflh = [1] + list(range(hf)) + [hf - 2]
    reflw = [1] + list(range(wf)) + [wf - 2]
    S = np.zeros((n_out, kch * kcw, HW), np.float32)
    for oi in range(ho_c):
        for oj in range(wo_c):
            p = oi * wo_c + oj
            for di in range(kch):
                for dj in range(kcw):
                    r = reflh[oi + di] * wf + reflw[oj + dj]
                    S[p, di * kcw + dj, r] += 1.0
    w16 = jnp.transpose(w_cls[0], (1, 2, 0)).reshape(kch * kcw, C)
    gt_one = jnp.einsum('pkr,kc->prc', jnp.asarray(S), w16)          # (P,HW,C)
    gt = jnp.tile(gt_one, (1, B, 1))                                 # (P,B*HW,C)
    bsum = jnp.asarray(np.kron(np.eye(B, dtype=np.float32),
                               np.ones((1, HW), np.float32)))        # (B,B*HW)

    arrays = {
        'down': layer_arrays,
        'w4': w4, 'b4': b4r,
        'w_gap': params['w_gap'].astype(jnp.float32),
        'w_gmp': params['w_gmp'].astype(jnp.float32),
        'wprime': wprime, 'bconv': bconv,
        'gt': gt, 'bsum': bsum,
    }
    cfg = {'down': layer_cfg, 'hf': hf, 'wf': wf,
           'ho_cls': ho_c, 'wo_cls': wo_c}
    return arrays, cfg


# --------------------------------------------------------------------------
# Full Discriminator forward (Pallas path).
# --------------------------------------------------------------------------
def discriminator_forward(arrays, x_nchw, *, cfg):
    x = jnp.transpose(x_nchw, (0, 2, 3, 1)).astype(jnp.bfloat16)     # NCHW->NHWC
    for arrs, lcfg in zip(arrays['down'], cfg['down']):
        x = _conv_layer(x, arrs, lcfg)
    # final stride-1 conv: patch gather in XLA glue (fuses with the previous
    # layer's writeback); its matmul + CAM head + classifier run in one kernel.
    patches, hf, wf = _im2col(x, 4, 4, 1)
    B = x.shape[0]
    p4 = patches.reshape(B * hf * wf, patches.shape[-1])
    cam, heat, cls = _tail_call(p4, arrays)
    cls_nchw = cls.reshape(B, 1, cfg['ho_cls'], cfg['wo_cls'])
    heat_nchw = jnp.transpose(heat.reshape(B, hf, wf, 1), (0, 3, 1, 2))
    return cls_nchw, cam, heat_nchw


# --------------------------------------------------------------------------
# Pure-JAX reference (same math, lax conv) used only for a correctness check.
# --------------------------------------------------------------------------
def discriminator_reference(params, x_nchw):
    def conv_ref(x, w, b, stride, act):
        xp = jnp.pad(x, ((0, 0), (1, 1), (1, 1), (0, 0)), mode='reflect')
        wt = jnp.transpose(w, (2, 3, 1, 0))
        y = jax.lax.conv_general_dilated(
            xp, wt, (stride, stride), 'VALID',
            dimension_numbers=('NHWC', 'HWIO', 'NHWC'))
        if b is not None:
            y = y + b
        if act:
            y = jnp.where(y >= 0, y, LEAKY_SLOPE * y)
        return y

    down = params['down']
    strides = [2] * (len(down) - 1) + [1]
    x = jnp.transpose(x_nchw, (0, 2, 3, 1))
    for (w, b), s in zip(down, strides):
        x = conv_ref(x, w, b, s, True)
    B, H, W, C = x.shape
    gap = jnp.mean(x, axis=(1, 2))
    gmp = jnp.max(x, axis=(1, 2))
    cam = jnp.concatenate([gap @ params['w_gap'].T, gmp @ params['w_gmp'].T], 1)
    xin = jnp.concatenate([x * params['w_gap'][0], x * params['w_gmp'][0]], -1)
    wc = params['w_1x1'].reshape(C, 2 * C)
    y = jnp.einsum('bhwk,ck->bhwc', xin, wc) + params['b_1x1']
    y = jnp.where(y >= 0, y, LEAKY_SLOPE * y)
    heat = jnp.sum(y, axis=-1, keepdims=True)
    out = conv_ref(y, params['w_cls'], None, 1, False)
    return (jnp.transpose(out, (0, 3, 1, 2)), cam,
            jnp.transpose(heat, (0, 3, 1, 2)))


# --------------------------------------------------------------------------
# Deterministic parameter init mirroring the PyTorch __init__ shapes.
# --------------------------------------------------------------------------
def init_params(key, channels, features, n_down):
    ks = jax.random.split(key, 2 * (n_down + 1) + 8)
    it = iter(range(len(ks)))
    nk = lambda: ks[next(it)]

    specs = [(channels, features)]
    for i in range(n_down - 1):
        cin = features << i
        specs.append((cin, cin * 2))
    out_ch = features << (n_down - 1)
    embed = out_ch * 2
    specs.append((out_ch, embed))

    down = []
    for cin, cout in specs:
        wstd = (2.0 / (cin * 16)) ** 0.5
        w = jax.random.normal(nk(), (cout, cin, 4, 4), jnp.float32) * wstd
        b = jax.random.normal(nk(), (cout,), jnp.float32) * 0.01
        down.append((w, b))

    return {
        'down': down,
        'w_gap': jax.random.normal(nk(), (1, embed), jnp.float32) * embed ** -0.5,
        'w_gmp': jax.random.normal(nk(), (1, embed), jnp.float32) * embed ** -0.5,
        'w_1x1': jax.random.normal(nk(), (embed, 2 * embed, 1, 1), jnp.float32)
                 * (2.0 / (2 * embed)) ** 0.5,
        'b_1x1': jax.random.normal(nk(), (embed,), jnp.float32) * 0.01,
        'w_cls': jax.random.normal(nk(), (1, embed, 4, 4), jnp.float32)
                 * (1.0 / (embed * 16)) ** 0.5,
    }


if __name__ == "__main__":
    B, C, H, W = 2, 3, 64, 64          # 64 -> 32 -> 16 -> 8 -> 4 -> 3, cls 2x2
    features, n_down = 8, 4            # embed_dim = 128
    key = jax.random.PRNGKey(0)
    params = init_params(key, C, features, n_down)
    x = jax.random.normal(jax.random.fold_in(key, 1234), (B, C, H, W), jnp.float32)

    arrays, cfg = prepare_params(params, (B, C, H, W))   # one-time hoisted prep
    fwd = jax.jit(functools.partial(discriminator_forward, cfg=cfg))
    out, cam, heat = fwd(arrays, x)
    jax.block_until_ready((out, cam, heat))

    ref_out, ref_cam, ref_heat = discriminator_reference(params, x)
    for got, ref, name in ((out, ref_out, "logits"),
                           (cam, ref_cam, "cam_logit"),
                           (heat, ref_heat, "heat_map")):
        err = float(jnp.max(jnp.abs(got - ref)))
        scale = float(jnp.max(jnp.abs(ref))) + 1.0
        assert err < 5e-2 * scale, f"{name}: max abs err {err} (scale {scale})"

    assert out.shape == (B, 1, 2, 2)
    assert cam.shape == (B, 2)
    assert heat.shape == (B, 1, 3, 3)
    print("KERNEL_OK")
</pallas_src>

<mosaic_0001>
module attributes {stable_mosaic.version = 11 : i64} {
  func.func @_matmul_bias_act_t_kernel(%arg0: i32, %arg1: memref<8x48xbf16, #tpu.memory_space<vmem>>, %arg2: memref<48x2048xbf16, #tpu.memory_space<vmem>>, %arg3: memref<8x1xf32, #tpu.memory_space<vmem>>, %arg4: memref<8x2048xbf16, #tpu.memory_space<vmem>>) attributes {dimension_semantics = [#tpu.dimension_semantics<parallel>], iteration_bounds = array<i64: 1>, scalar_prefetch = 0 : i64, scratch_operands = 0 : i64, tpu.core_type = #tpu.core_type<tc>, window_params = [{pipeline_mode = #tpu.pipeline_mode<synchronous>, transform_indices = @transform_0, window_bounds = array<i64: 8, 48>}, {transform_indices = @transform_1, window_bounds = array<i64: 48, 2048>}, {pipeline_mode = #tpu.pipeline_mode<synchronous>, transform_indices = @transform_2, window_bounds = array<i64: 8, 1>}, {transform_indices = @transform_3, window_bounds = array<i64: 8, 2048>}]} {
    %c0 = arith.constant 0 : index
    %c0_0 = arith.constant 0 : index
    %0 = vector.load %arg1[%c0, %c0_0] : memref<8x48xbf16, #tpu.memory_space<vmem>>, vector<8x48xbf16>
    %c0_1 = arith.constant 0 : index
    %c0_2 = arith.constant 0 : index
    %1 = vector.load %arg2[%c0_1, %c0_2] : memref<48x2048xbf16, #tpu.memory_space<vmem>>, vector<48x2048xbf16>
    %cst = arith.constant dense<0.000000e+00> : vector<8x2048xf32>
    %2 = tpu.matmul %0, %1, %cst {dimension_numbers = #tpu.dot_dimension_numbers<[1], [0], [0], [1], [0, 0, 1, 1], [], []>} : vector<8x48xbf16>, vector<48x2048xbf16>, vector<8x2048xf32> -> vector<8x2048xf32>
    %c0_3 = arith.constant 0 : index
    %c0_4 = arith.constant 0 : index
    %3 = vector.load %arg3[%c0_3, %c0_4] : memref<8x1xf32, #tpu.memory_space<vmem>>, vector<8x1xf32>
    %4 = vector.broadcast %3 : vector<8x1xf32> to vector<8x2048xf32>
    %5 = arith.addf %2, %4 : vector<8x2048xf32>
    %cst_5 = arith.constant 0.000000e+00 : f32
    %6 = vector.broadcast %cst_5 : f32 to vector<8x2048xf32>
    %7 = arith.cmpf oge, %5, %6 : vector<8x2048xf32>
    %cst_6 = arith.constant 2.000000e-01 : f32
    %8 = vector.broadcast %cst_6 : f32 to vector<8x2048xf32>
    %9 = arith.mulf %8, %5 : vector<8x2048xf32>
    %10 = arith.select %7, %5, %9 : vector<8x2048xi1>, vector<8x2048xf32>
    %11 = arith.truncf %10 : vector<8x2048xf32> to vector<8x2048xbf16>
    %c0_7 = arith.constant 0 : index
    %c0_8 = arith.constant 0 : index
    %12 = vector.load %arg4[%c0_7, %c0_8] : memref<8x2048xbf16, #tpu.memory_space<vmem>>, vector<8x2048xbf16>
    tpu.vector_store %arg4[%c0_7, %c0_8], %11 {strides = array<i32>} : memref<8x2048xbf16, #tpu.memory_space<vmem>>, vector<8x2048xbf16>,
    return
  }
  func.func @transform_0(%arg0: i32) -> (i32, i32) {
    %c0_i32 = arith.constant 0 : i32
    %c0_i32_0 = arith.constant 0 : i32
    %c0_i32_1 = arith.constant 0 : i32
    return %c0_i32, %c0_i32_0 : i32, i32
  }
  func.func @transform_1(%arg0: i32) -> (i32, i32) {
    %c0_i32 = arith.constant 0 : i32
    %c0_i32_0 = arith.constant 0 : i32
    return %c0_i32, %arg0 : i32, i32
  }
  func.func @transform_2(%arg0: i32) -> (i32, i32) {
    %c0_i32 = arith.constant 0 : i32
    %c0_i32_0 = arith.constant 0 : i32
    %c0_i32_1 = arith.constant 0 : i32
    return %c0_i32, %c0_i32_0 : i32, i32
  }
  func.func @transform_3(%arg0: i32) -> (i32, i32) {
    %c0_i32 = arith.constant 0 : i32
    %c0_i32_0 = arith.constant 0 : i32
    return %c0_i32, %arg0 : i32, i32
  }
}

module attributes {stable_mosaic.version = 11 : i64} {
  func.func @_matmul_bias_act_t_kernel(%arg0: i32, %arg1: memref<16x128xbf16, #tpu.memory_space<vmem>>, %arg2: memref<128x512xbf16, #tpu.memory_space<vmem>>, %arg3: memref<16x1xf32, #tpu.memory_space<vmem>>, %arg4: memref<16x512xbf16, #tpu.memory_space<vmem>>) attributes {dimension_semantics = [#tpu.dimension_semantics<parallel>], iteration_bounds = array<i64: 1>, scalar_prefetch = 0 : i64, scratch_operands = 0 : i64, tpu.core_type = #tpu.core_type<tc>, window_params = [{pipeline_mode = #tpu.pipeline_mode<synchronous>, transform_indices = @transform_0, window_bounds = array<i64: 16, 128>}, {transform_indices = @transform_1, window_bounds = array<i64: 128, 512>}, {pipeline_mode = #tpu.pipeline_mode<synchronous>, transform_indices = @transform_2, window_bounds = array<i64: 16, 1>}, {transform_indices = @transform_3, window_bounds = array<i64: 16, 512>}]} {
    %c0 = arith.constant 0 : index
    %c0_0 = arith.constant 0 : index
    %0 = vector.load %arg1[%c0, %c0_0] : memref<16x128xbf16, #tpu.memory_space<vmem>>, vector<16x128xbf16>
    %c0_1 = arith.constant 0 : index
    %c0_2 = arith.constant 0 : index
    %1 = vector.load %arg2[%c0_1, %c0_2] : memref<128x512xbf16, #tpu.memory_space<vmem>>, vector<128x512xbf16>
    %cst = arith.constant dense<0.000000e+00> : vector<16x512xf32>
    %2 = tpu.matmul %0, %1, %cst {dimension_numbers = #tpu.dot_dimension_numbers<[1], [0], [0], [1], [0, 0, 1, 1], [], []>} : vector<16x128xbf16>, vector<128x512xbf16>, vector<16x512xf32> -> vector<16x512xf32>
    %c0_3 = arith.constant 0 : index
    %c0_4 = arith.constant 0 : index
    %3 = vector.load %arg3[%c0_3, %c0_4] : memref<16x1xf32, #tpu.memory_space<vmem>>, vector<16x1xf32>
    %4 = vector.broadcast %3 : vector<16x1xf32> to vector<16x512xf32>
    %5 = arith.addf %2, %4 : vector<16x512xf32>
    %cst_5 = arith.constant 0.000000e+00 : f32
    %6 = vector.broadcast %cst_5 : f32 to vector<16x512xf32>
    %7 = arith.cmpf oge, %5, %6 : vector<16x512xf32>
    %cst_6 = arith.constant 2.000000e-01 : f32
    %8 = vector.broadcast %cst_6 : f32 to vector<16x512xf32>
    %9 = arith.mulf %8, %5 : vector<16x512xf32>
    %10 = arith.select %7, %5, %9 : vector<16x512xi1>, vector<16x512xf32>
    %11 = arith.truncf %10 : vector<16x512xf32> to vector<16x512xbf16>
    %c0_7 = arith.constant 0 : index
    %c0_8 = arith.constant 0 : index
    %12 = vector.load %arg4[%c0_7, %c0_8] : memref<16x512xbf16, #tpu.memory_space<vmem>>, vector<16x512xbf16>
    tpu.vector_store %arg4[%c0_7, %c0_8], %11 {strides = array<i32>} : memref<16x512xbf16, #tpu.memory_space<vmem>>, vector<16x512xbf16>,
    return
  }
  func.func @transform_0(%arg0: i32) -> (i32, i32) {
    %c0_i32 = arith.constant 0 : i32
    %c0_i32_0 = arith.constant 0 : i32
    %c0_i32_1 = arith.constant 0 : i32
    return %c0_i32, %c0_i32_0 : i32, i32
  }
  func.func @transform_1(%arg0: i32) -> (i32, i32) {
    %c0_i32 = arith.constant 0 : i32
    %c0_i32_0 = arith.constant 0 : i32
    return %c0_i32, %arg0 : i32, i32
  }
  func.func @transform_2(%arg0: i32) -> (i32, i32) {
    %c0_i32 = arith.constant 0 : i32
    %c0_i32_0 = arith.constant 0 : i32
    %c0_i32_1 = arith.constant 0 : i32
    return %c0_i32, %c0_i32_0 : i32, i32
  }
  func.func @transform_3(%arg0: i32) -> (i32, i32) {
    %c0_i32 = arith.constant 0 : i32
    %c0_i32_0 = arith.constant 0 : i32
    return %c0_i32, %arg0 : i32, i32
  }
}

module attributes {stable_mosaic.version = 11 : i64} {
  func.func @_matmul_bias_act_kernel(%arg0: i32, %arg1: memref<128x256xbf16, #tpu.memory_space<vmem>>, %arg2: memref<256x32xbf16, #tpu.memory_space<vmem>>, %arg3: memref<1x32xf32, #tpu.memory_space<vmem>>, %arg4: memref<128x32xbf16, #tpu.memory_space<vmem>>) attributes {dimension_semantics = [#tpu.dimension_semantics<parallel>], iteration_bounds = array<i64: 1>, scalar_prefetch = 0 : i64, scratch_operands = 0 : i64, tpu.core_type = #tpu.core_type<tc>, window_params = [{transform_indices = @transform_0, window_bounds = array<i64: 128, 256>}, {pipeline_mode = #tpu.pipeline_mode<synchronous>, transform_indices = @transform_1, window_bounds = array<i64: 256, 32>}, {pipeline_mode = #tpu.pipeline_mode<synchronous>, transform_indices = @transform_2, window_bounds = array<i64: 1, 32>}, {transform_indices = @transform_3, window_bounds = array<i64: 128, 32>}]} {
    %c0 = arith.constant 0 : index
    %c0_0 = arith.constant 0 : index
    %0 = vector.load %arg1[%c0, %c0_0] : memref<128x256xbf16, #tpu.memory_space<vmem>>, vector<128x256xbf16>
    %c0_1 = arith.constant 0 : index
    %c0_2 = arith.constant 0 : index
    %1 = vector.load %arg2[%c0_1, %c0_2] : memref<256x32xbf16, #tpu.memory_space<vmem>>, vector<256x32xbf16>
    %cst = arith.constant dense<0.000000e+00> : vector<128x32xf32>
    %2 = tpu.matmul %0, %1, %cst {dimension_numbers = #tpu.dot_dimension_numbers<[1], [0], [0], [1], [0, 0, 1, 1], [], []>} : vector<128x256xbf16>, vector<256x32xbf16>, vector<128x32xf32> -> vector<128x32xf32>
    %c0_3 = arith.constant 0 : index
    %c0_4 = arith.constant 0 : index
    %3 = vector.load %arg3[%c0_3, %c0_4] : memref<1x32xf32, #tpu.memory_space<vmem>>, vector<1x32xf32>
    %4 = vector.broadcast %3 : vector<1x32xf32> to vector<128x32xf32>
    %5 = arith.addf %2, %4 : vector<128x32xf32>
    %cst_5 = arith.constant 0.000000e+00 : f32
    %6 = vector.broadcast %cst_5 : f32 to vector<128x32xf32>
    %7 = arith.cmpf oge, %5, %6 : vector<128x32xf32>
    %cst_6 = arith.constant 2.000000e-01 : f32
    %8 = vector.broadcast %cst_6 : f32 to vector<128x32xf32>
    %9 = arith.mulf %8, %5 : vector<128x32xf32>
    %10 = arith.select %7, %5, %9 : vector<128x32xi1>, vector<128x32xf32>
    %11 = arith.truncf %10 : vector<128x32xf32> to vector<128x32xbf16>
    %c0_7 = arith.constant 0 : index
    %c0_8 = arith.constant 0 : index
    %12 = vector.load %arg4[%c0_7, %c0_8] : memref<128x32xbf16, #tpu.memory_space<vmem>>, vector<128x32xbf16>
    tpu.vector_store %arg4[%c0_7, %c0_8], %11 {strides = array<i32>} : memref<128x32xbf16, #tpu.memory_space<vmem>>, vector<128x32xbf16>,
    return
  }
  func.func @transform_0(%arg0: i32) -> (i32, i32) {
    %c0_i32 = arith.constant 0 : i32
    %c0_i32_0 = arith.constant 0 : i32
    return %arg0, %c0_i32 : i32, i32
  }
  func.func @transform_1(%arg0: i32) -> (i32, i32) {
    %c0_i32 = arith.constant 0 : i32
    %c0_i32_0 = arith.constant 0 : i32
    %c0_i32_1 = arith.constant 0 : i32
    return %c0_i32, %c0_i32_0 : i32, i32
  }
  func.func @transform_2(%arg0: i32) -> (i32, i32) {
    %c0_i32 = arith.constant 0 : i32
    %c0_i32_0 = arith.constant 0 : i32
    %c0_i32_1 = arith.constant 0 : i32
    return %c0_i32, %c0_i32_0 : i32, i32
  }
  func.func @transform_3(%arg0: i32) -> (i32, i32) {
    %c0_i32 = arith.constant 0 : i32
    %c0_i32_0 = arith.constant 0 : i32
    return %arg0, %c0_i32 : i32, i32
  }
}

module attributes {stable_mosaic.version = 11 : i64} {
  func.func @_matmul_bias_act_kernel(%arg0: i32, %arg1: memref<32x512xbf16, #tpu.memory_space<vmem>>, %arg2: memref<512x64xbf16, #tpu.memory_space<vmem>>, %arg3: memref<1x64xf32, #tpu.memory_space<vmem>>, %arg4: memref<32x64xbf16, #tpu.memory_space<vmem>>) attributes {dimension_semantics = [#tpu.dimension_semantics<parallel>], iteration_bounds = array<i64: 1>, scalar_prefetch = 0 : i64, scratch_operands = 0 : i64, tpu.core_type = #tpu.core_type<tc>, window_params = [{transform_indices = @transform_0, window_bounds = array<i64: 32, 512>}, {pipeline_mode = #tpu.pipeline_mode<synchronous>, transform_indices = @transform_1, window_bounds = array<i64: 512, 64>}, {pipeline_mode = #tpu.pipeline_mode<synchronous>, transform_indices = @transform_2, window_bounds = array<i64: 1, 64>}, {transform_indices = @transform_3, window_bounds = array<i64: 32, 64>}]} {
    %c0 = arith.constant 0 : index
    %c0_0 = arith.constant 0 : index
    %0 = vector.load %arg1[%c0, %c0_0] : memref<32x512xbf16, #tpu.memory_space<vmem>>, vector<32x512xbf16>
    %c0_1 = arith.constant 0 : index
    %c0_2 = arith.constant 0 : index
    %1 = vector.load %arg2[%c0_1, %c0_2] : memref<512x64xbf16, #tpu.memory_space<vmem>>, vector<512x64xbf16>
    %cst = arith.constant dense<0.000000e+00> : vector<32x64xf32>
    %2 = tpu.matmul %0, %1, %cst {dimension_numbers = #tpu.dot_dimension_numbers<[1], [0], [0], [1], [0, 0, 1, 1], [], []>} : vector<32x512xbf16>, vector<512x64xbf16>, vector<32x64xf32> -> vector<32x64xf32>
    %c0_3 = arith.constant 0 : index
    %c0_4 = arith.constant 0 : index
    %3 = vector.load %arg3[%c0_3, %c0_4] : memref<1x64xf32, #tpu.memory_space<vmem>>, vector<1x64xf32>
    %4 = vector.broadcast %3 : vector<1x64xf32> to vector<32x64xf32>
    %5 = arith.addf %2, %4 : vector<32x64xf32>
    %cst_5 = arith.constant 0.000000e+00 : f32
    %6 = vector.broadcast %cst_5 : f32 to vector<32x64xf32>
    %7 = arith.cmpf oge, %5, %6 : vector<32x64xf32>
    %cst_6 = arith.constant 2.000000e-01 : f32
    %8 = vector.broadcast %cst_6 : f32 to vector<32x64xf32>
    %9 = arith.mulf %8, %5 : vector<32x64xf32>
    %10 = arith.select %7, %5, %9 : vector<32x64xi1>, vector<32x64xf32>
    %11 = arith.truncf %10 : vector<32x64xf32> to vector<32x64xbf16>
    %c0_7 = arith.constant 0 : index
    %c0_8 = arith.constant 0 : index
    %12 = vector.load %arg4[%c0_7, %c0_8] : memref<32x64xbf16, #tpu.memory_space<vmem>>, vector<32x64xbf16>
    tpu.vector_store %arg4[%c0_7, %c0_8], %11 {strides = array<i32>} : memref<32x64xbf16, #tpu.memory_space<vmem>>, vector<32x64xbf16>,
    return
  }
  func.func @transform_0(%arg0: i32) -> (i32, i32) {
    %c0_i32 = arith.constant 0 : i32
    %c0_i32_0 = arith.constant 0 : i32
    return %arg0, %c0_i32 : i32, i32
  }
  func.func @transform_1(%arg0: i32) -> (i32, i32) {
    %c0_i32 = arith.constant 0 : i32
    %c0_i32_0 = arith.constant 0 : i32
    %c0_i32_1 = arith.constant 0 : i32
    return %c0_i32, %c0_i32_0 : i32, i32
  }
  func.func @transform_2(%arg0: i32) -> (i32, i32) {
    %c0_i32 = arith.constant 0 : i32
    %c0_i32_0 = arith.constant 0 : i32
    %c0_i32_1 = arith.constant 0 : i32
    return %c0_i32, %c0_i32_0 : i32, i32
  }
  func.func @transform_3(%arg0: i32) -> (i32, i32) {
    %c0_i32 = arith.constant 0 : i32
    %c0_i32_0 = arith.constant 0 : i32
    return %arg0, %c0_i32 : i32, i32
  }
}

module attributes {stable_mosaic.version = 11 : i64} {
  func.func @_tail_kernel(%arg0: memref<18x1024xbf16, #tpu.memory_space<vmem>>, %arg1: memref<1024x128xbf16, #tpu.memory_space<vmem>>, %arg2: memref<1x128xf32, #tpu.memory_space<vmem>>, %arg3: memref<1x128xf32, #tpu.memory_space<vmem>>, %arg4: memref<1x128xf32, #tpu.memory_space<vmem>>, %arg5: memref<128x128xbf16, #tpu.memory_space<vmem>>, %arg6: memref<1x128xf32, #tpu.memory_space<vmem>>, %arg7: memref<4x18x128xf32, #tpu.memory_space<vmem>>, %arg8: memref<2x18xf32, #tpu.memory_space<vmem>>, %arg9: memref<2x2xf32, #tpu.memory_space<vmem>>, %arg10: memref<18x1xf32, #tpu.memory_space<vmem>>, %arg11: memref<2x4xf32, #tpu.memory_space<vmem>>) attributes {dimension_semantics = [], scalar_prefetch = 0 : i64, scratch_operands = 0 : i64, tpu.core_type = #tpu.core_type<tc>} {
    %c0 = arith.constant 0 : index
    %c0_0 = arith.constant 0 : index
    %0 = vector.load %arg0[%c0, %c0_0] : memref<18x1024xbf16, #tpu.memory_space<vmem>>, vector<18x1024xbf16>
    %c0_1 = arith.constant 0 : index
    %c0_2 = arith.constant 0 : index
    %1 = vector.load %arg1[%c0_1, %c0_2] : memref<1024x128xbf16, #tpu.memory_space<vmem>>, vector<1024x128xbf16>
    %cst = arith.constant dense<0.000000e+00> : vector<18x128xf32>
    %2 = tpu.matmul %0, %1, %cst {dimension_numbers = #tpu.dot_dimension_numbers<[1], [0], [0], [1], [0, 0, 1, 1], [], []>} : vector<18x1024xbf16>, vector<1024x128xbf16>, vector<18x128xf32> -> vector<18x128xf32>
    %c0_3 = arith.constant 0 : index
    %c0_4 = arith.constant 0 : index
    %3 = vector.load %arg2[%c0_3, %c0_4] : memref<1x128xf32, #tpu.memory_space<vmem>>, vector<1x128xf32>
    %4 = vector.broadcast %3 : vector<1x128xf32> to vector<18x128xf32>
    %5 = arith.addf %2, %4 : vector<18x128xf32>
    %cst_5 = arith.constant 0.000000e+00 : f32
    %6 = vector.broadcast %cst_5 : f32 to vector<18x128xf32>
    %7 = arith.cmpf oge, %5, %6 : vector<18x128xf32>
    %cst_6 = arith.constant 2.000000e-01 : f32
    %8 = vector.broadcast %cst_6 : f32 to vector<18x128xf32>
    %9 = arith.mulf %8, %5 : vector<18x128xf32>
    %10 = arith.select %7, %5, %9 : vector<18x128xi1>, vector<18x128xf32>
    %c0_7 = arith.constant 0 : index
    %c0_8 = arith.constant 0 : index
    %11 = vector.load %arg8[%c0_7, %c0_8] : memref<2x18xf32, #tpu.memory_space<vmem>>, vector<2x18xf32>
    %cst_9 = arith.constant dense<0.000000e+00> : vector<2x128xf32>
    %12 = tpu.matmul %11, %10, %cst_9 {dimension_numbers = #tpu.dot_dimension_numbers<[1], [0], [0], [1], [0, 0, 1, 1], [], []>} : vector<2x18xf32>, vector<18x128xf32>, vector<2x128xf32> -> vector<2x128xf32>
    %cst_10 = arith.constant 0.111111112 : f32
    %13 = vector.broadcast %cst_10 : f32 to vector<2x128xf32>
    %14 = arith.mulf %12, %13 : vector<2x128xf32>
    %15 = tpu.iota {dimensions = array<i32: 0>} : vector<18x1xi32>
    %c0_i32 = arith.constant 0 : i32
    %16 = vector.broadcast %c0_i32 : i32 to vector<18x1xi32>
    %17 = arith.cmpi sge, %15, %16 : vector<18x1xi32>
    %c9_i32 = arith.constant 9 : i32
    %18 = vector.broadcast %c9_i32 : i32 to vector<18x1xi32>
    %19 = arith.cmpi slt, %15, %18 : vector<18x1xi32>
    %20 = arith.andi %17, %19 : vector<18x1xi1>
    %cst_11 = arith.constant -1.000000e+30 : f32
    %21 = vector.shape_cast %20 : vector<18x1xi1> to vector<18x1xi1>
    %22 = vector.broadcast %21 : vector<18x1xi1> to vector<18x128xi1>
    %23 = vector.broadcast %cst_11 : f32 to vector<18x128xf32>
    %24 = arith.select %22, %10, %23 : vector<18x128xi1>, vector<18x128xf32>
    %cst_12 = arith.constant dense<0xFF800000> : vector<128xf32>
    %25 = vector.multi_reduction <maximumf>, %24, %cst_12 [0] : vector<18x128xf32> to vector<128xf32>
    %26 = vector.shape_cast %25 : vector<128xf32> to vector<1x128xf32>
    %c9_i32_13 = arith.constant 9 : i32
    %27 = vector.broadcast %c9_i32_13 : i32 to vector<18x1xi32>
    %28 = arith.cmpi sge, %15, %27 : vector<18x1xi32>
    %c18_i32 = arith.constant 18 : i32
    %29 = vector.broadcast %c18_i32 : i32 to vector<18x1xi32>
    %30 = arith.cmpi slt, %15, %29 : vector<18x1xi32>
    %31 = arith.andi %28, %30 : vector<18x1xi1>
    %cst_14 = arith.constant -1.000000e+30 : f32
    %32 = vector.shape_cast %31 : vector<18x1xi1> to vector<18x1xi1>
    %33 = vector.broadcast %32 : vector<18x1xi1> to vector<18x128xi1>
    %34 = vector.broadcast %cst_14 : f32 to vector<18x128xf32>
    %35 = arith.select %33, %10, %34 : vector<18x128xi1>, vector<18x128xf32>
    %cst_15 = arith.constant dense<0xFF800000> : vector<128xf32>
    %36 = vector.multi_reduction <maximumf>, %35, %cst_15 [0] : vector<18x128xf32> to vector<128xf32>
    %37 = vector.shape_cast %36 : vector<128xf32> to vector<1x128xf32>
    %38 = tpu.concatenate %26, %37 in 0 : vector<1x128xf32>, vector<1x128xf32> -> vector<2x128xf32>
    %c0_16 = arith.constant 0 : index
    %c0_17 = arith.constant 0 : index
    %39 = vector.load %arg3[%c0_16, %c0_17] : memref<1x128xf32, #tpu.memory_space<vmem>>, vector<1x128xf32>
    %40 = vector.broadcast %39 : vector<1x128xf32> to vector<2x128xf32>
    %41 = arith.mulf %14, %40 : vector<2x128xf32>
    %cst_18 = arith.constant dense<0.000000e+00> : vector<2xf32>
    %42 = vector.multi_reduction <add>, %41, %cst_18 [1] : vector<2x128xf32> to vector<2xf32>
    %43 = vector.shape_cast %42 : vector<2xf32> to vector<2x1xf32>
    %c0_19 = arith.constant 0 : index
    %c0_20 = arith.constant 0 : index
    %44 = vector.load %arg4[%c0_19, %c0_20] : memref<1x128xf32, #tpu.memory_space<vmem>>, vector<1x128xf32>
    %45 = vector.broadcast %44 : vector<1x128xf32> to vector<2x128xf32>
    %46 = arith.mulf %38, %45 : vector<2x128xf32>
    %cst_21 = arith.constant dense<0.000000e+00> : vector<2xf32>
    %47 = vector.multi_reduction <add>, %46, %cst_21 [1] : vector<2x128xf32> to vector<2xf32>
    %48 = vector.shape_cast %47 : vector<2xf32> to vector<2x1xf32>
    %49 = tpu.concatenate %43, %48 in 1 : vector<2x1xf32>, vector<2x1xf32> -> vector<2x2xf32>
    %c0_22 = arith.constant 0 : index
    %c0_23 = arith.constant 0 : index
    %50 = vector.load %arg9[%c0_22, %c0_23] : memref<2x2xf32, #tpu.memory_space<vmem>>, vector<2x2xf32>
    tpu.vector_store %arg9[%c0_22, %c0_23], %49 {strides = array<i32>} : memref<2x2xf32, #tpu.memory_space<vmem>>, vector<2x2xf32>,
    %51 = arith.truncf %10 : vector<18x128xf32> to vector<18x128xbf16>
    %c0_24 = arith.constant 0 : index
    %c0_25 = arith.constant 0 : index
    %52 = vector.load %arg5[%c0_24, %c0_25] : memref<128x128xbf16, #tpu.memory_space<vmem>>, vector<128x128xbf16>
    %cst_26 = arith.constant dense<0.000000e+00> : vector<18x128xf32>
    %53 = tpu.matmul %51, %52, %cst_26 {dimension_numbers = #tpu.dot_dimension_numbers<[1], [0], [0], [1], [0, 0, 1, 1], [], []>} : vector<18x128xbf16>, vector<128x128xbf16>, vector<18x128xf32> -> vector<18x128xf32>
    %c0_27 = arith.constant 0 : index
    %c0_28 = arith.constant 0 : index
    %54 = vector.load %arg6[%c0_27, %c0_28] : memref<1x128xf32, #tpu.memory_space<vmem>>, vector<1x128xf32>
    %55 = vector.broadcast %54 : vector<1x128xf32> to vector<18x128xf32>
    %56 = arith.addf %53, %55 : vector<18x128xf32>
    %cst_29 = arith.constant 0.000000e+00 : f32
    %57 = vector.broadcast %cst_29 : f32 to vector<18x128xf32>
    %58 = arith.cmpf oge, %56, %57 : vector<18x128xf32>
    %cst_30 = arith.constant 2.000000e-01 : f32
    %59 = vector.broadcast %cst_30 : f32 to vector<18x128xf32>
    %60 = arith.mulf %59, %56 : vector<18x128xf32>
    %61 = arith.select %58, %56, %60 : vector<18x128xi1>, vector<18x128xf32>
    %cst_31 = arith.constant dense<0.000000e+00> : vector<18xf32>
    %62 = vector.multi_reduction <add>, %61, %cst_31 [1] : vector<18x128xf32> to vector<18xf32>
    %63 = vector.shape_cast %62 : vector<18xf32> to vector<18x1xf32>
    %c0_32 = arith.constant 0 : index
    %c0_33 = arith.constant 0 : index
    %64 = vector.load %arg10[%c0_32, %c0_33] : memref<18x1xf32, #tpu.memory_space<vmem>>, vector<18x1xf32>
    tpu.vector_store %arg10[%c0_32, %c0_33], %63 {strides = array<i32>} : memref<18x1xf32, #tpu.memory_space<vmem>>, vector<18x1xf32>,
    %c0_34 = arith.constant 0 : index
    %c0_35 = arith.constant 0 : index
    %c0_36 = arith.constant 0 : index
    %65 = vector.load %arg7[%c0_34, %c0_35, %c0_36] : memref<4x18x128xf32, #tpu.memory_space<vmem>>, vector<1x18x128xf32>
    %66 = vector.shape_cast %65 : vector<1x18x128xf32> to vector<18x128xf32>
    %67 = arith.mulf %61, %66 : vector<18x128xf32>
    %cst_37 = arith.constant dense<0.000000e+00> : vector<18xf32>
    %68 = vector.multi_reduction <add>, %67, %cst_37 [1] : vector<18x128xf32> to vector<18xf32>
    %69 = vector.shape_cast %68 : vector<18xf32> to vector<18x1xf32>
    %c1 = arith.constant 1 : index
    %c0_38 = arith.constant 0 : index
    %c0_39 = arith.constant 0 : index
    %70 = vector.load %arg7[%c1, %c0_38, %c0_39] : memref<4x18x128xf32, #tpu.memory_space<vmem>>, vector<1x18x128xf32>
    %71 = vector.shape_cast %70 : vector<1x18x128xf32> to vector<18x128xf32>
    %72 = arith.mulf %61, %71 : vector<18x128xf32>
    %cst_40 = arith.constant dense<0.000000e+00> : vector<18xf32>
    %73 = vector.multi_reduction <add>, %72, %cst_40 [1] : vector<18x128xf32> to vector<18xf32>
    %74 = vector.shape_cast %73 : vector<18xf32> to vector<18x1xf32>
    %c2 = arith.constant 2 : index
    %c0_41 = arith.constant 0 : index
    %c0_42 = arith.constant 0 : index
    %75 = vector.load %arg7[%c2, %c0_41, %c0_42] : memref<4x18x128xf32, #tpu.memory_space<vmem>>, vector<1x18x128xf32>
    %76 = vector.shape_cast %75 : vector<1x18x128xf32> to vector<18x128xf32>
    %77 = arith.mulf %61, %76 : vector<18x128xf32>
    %cst_43 = arith.constant dense<0.000000e+00> : vector<18xf32>
    %78 = vector.multi_reduction <add>, %77, %cst_43 [1] : vector<18x128xf32> to vector<18xf32>
    %79 = vector.shape_cast %78 : vector<18xf32> to vector<18x1xf32>
    %c3 = arith.constant 3 : index
    %c0_44 = arith.constant 0 : index
    %c0_45 = arith.constant 0 : index
    %80 = vector.load %arg7[%c3, %c0_44, %c0_45] : memref<4x18x128xf32, #tpu.memory_space<vmem>>, vector<1x18x128xf32>
    %81 = vector.shape_cast %80 : vector<1x18x128xf32> to vector<18x128xf32>
    %82 = arith.mulf %61, %81 : vector<18x128xf32>
    %cst_46 = arith.constant dense<0.000000e+00> : vector<18xf32>
    %83 = vector.multi_reduction <add>, %82, %cst_46 [1] : vector<18x128xf32> to vector<18xf32>
    %84 = vector.shape_cast %83 : vector<18xf32> to vector<18x1xf32>
    %85 = tpu.concatenate %69, %74, %79, %84 in 1 : vector<18x1xf32>, vector<18x1xf32>, vector<18x1xf32>, vector<18x1xf32> -> vector<18x4xf32>
    %cst_47 = arith.constant dense<0.000000e+00> : vector<2x4xf32>
    %86 = tpu.matmul %11, %85, %cst_47 {dimension_numbers = #tpu.dot_dimension_numbers<[1], [0], [0], [1], [0, 0, 1, 1], [], []>} : vector<2x18xf32>, vector<18x4xf32>, vector<2x4xf32> -> vector<2x4xf32>
    %c0_48 = arith.constant 0 : index
    %c0_49 = arith.constant 0 : index
    %87 = vector.load %arg11[%c0_48, %c0_49] : memref<2x4xf32, #tpu.memory_space<vmem>>, vector<2x4xf32>
    tpu.vector_store %arg11[%c0_48, %c0_49], %86 {strides = array<i32>} : memref<2x4xf32, #tpu.memory_space<vmem>>, vector<2x4xf32>,
    return
  }
}

</mosaic_0001>

<bundles_post_ra>
// kernel: discriminator_forward.5
= control target key start
LH: loop header
LB: loop body
LE: loop exit
PB: predicated region body
PF: predicated region fallthrough
CT: control target
= control target key end

     0   :  { %v848_v3 = vmov 0   ;;  %vm310_vm0 = vcmask 392192   ;;  %s1239_s1 = inlined_call_operand.vmem [shape: bf16[48,2048], index: 1, kind: input, shape index: {}]   ;;  %s1240_s0 = inlined_call_operand.vmem [shape: bf16[8,48], index: 0, kind: input, shape index: {}]   ;;  %s1241_s2 = inlined_call_operand.vmem [shape: f32[8,1], index: 2, kind: input, shape index: {}]   ;;  %s1242_s3 = inlined_call_operand.vmem [shape: bf16[8,2048], index: 3, kind: output, shape index: {}]  }
   0x1   :  { %v720_v0 = vld [vmem:[%s1239_s1 + $0x100] sm:$0xf]  ;;  %v830_v2 = vld [vmem:[%s1239_s1 + $0x104] sm:$0xf]  ;;  %847 = vset.pattern.permute.xlu0 %v848_v3  ;;  %v728_v6 = vld [vmem:[%s1239_s1 + $0x108] sm:$0xf] }
   0x2   :  { %v838_v1 = vld [vmem:[%s1239_s1 + $0x13c] sm:$0xf0]  ;;  %v722_v5 = vld [vmem:[%s1239_s1 + $0x140] sm:$0xf0]  ;;  %v839_v7 = vld [vmem:[%s1239_s1 + $0x144] sm:$0xf0] }
   0x3   :  { %v721_v4 = vor.u32 %v838_v1, %v720_v0  ;;  %v725_v8 = vor.u32 %v830_v2, %v722_v5  ;;  %v729_v9 = vor.u32 %v839_v7, %v728_v6  ;;  %v831_v10 = vld [vmem:[%s1239_s1 + $0x10c] sm:$0xf]  ;;  %v656_v12 = vld [vmem:[%s1239_s1 + $0x80] sm:$0xf]  ;;  %v814_v15 = vld [vmem:[%s1239_s1 + $0x84] sm:$0xf] }
   0x4   :  { %v730_v11 = vld [vmem:[%s1239_s1 + $0x148] sm:$0xf0]  ;;  %v822_v14 = vld [vmem:[%s1239_s1 + $0xbc] sm:$0xf0]  ;;  %v658_v16 = vld [vmem:[%s1239_s1 + $0xc0] sm:$0xf0] }
   0x5   :  { %319 = vmatpush.bf16.msra.mxu0 %v721_v4  ;;  %v733_v13 = vor.u32 %v831_v10, %v730_v11  ;;  %332 = vmatpush.bf16.msra.mxu1 %v725_v8  ;;  %v657_v17 = vor.u32 %v822_v14, %v656_v12  ;;  %v661_v18 = vor.u32 %v814_v15, %v658_v16  ;;  %v664_v19 = vld [vmem:[%s1239_s1 + $0x88] sm:$0xf]  ;;  %v815_v21 = vld [vmem:[%s1239_s1 + $0x8c] sm:$0xf]  ;;  %v592_v24 = vld [vmem:[%s1239_s1] sm:$0xf] }
   0x6   :  { %345 = vmatpush.bf16.msra.mxu2 %v729_v9  ;;  %v823_v20 = vld [vmem:[%s1239_s1 + $0xc4] sm:$0xf0]  ;;  %v666_v23 = vld [vmem:[%s1239_s1 + $0xc8] sm:$0xf0]  ;;  %v806_v25 = vld [vmem:[%s1239_s1 + $0x3c] sm:$0xf0] }
   0x7   :  { %358 = vmatpush.bf16.msra.mxu3 %v733_v13  ;;  %v665_v22 = vor.u32 %v823_v20, %v664_v19  ;;  %v669_v26 = vor.u32 %v815_v21, %v666_v23  ;;  %v798_v27 = vld [vmem:[%s1239_s1 + $0x4] sm:$0xf]  ;;  %v600_v29 = vld [vmem:[%s1239_s1 + $0x8] sm:$0xf]  ;;  %v593_v30 = vor.u32 %v806_v25, %v592_v24  ;;  %v799_v32 = vld [vmem:[%s1239_s1 + $0xc] sm:$0xf] }
   0x8   :  { %v594_v28 = vld [vmem:[%s1239_s1 + $0x40] sm:$0xf0]  ;;  %v807_v31 = vld [vmem:[%s1239_s1 + $0x44] sm:$0xf0]  ;;  %v602_v33 = vld [vmem:[%s1239_s1 + $0x48] sm:$0xf0] }
   0x9   :  { %320 = vmatpush.bf16.msra.mxu0 %v657_v17  ;;  %333 = vmatpush.bf16.msra.mxu1 %v661_v18  ;;  %v597_v34 = vor.u32 %v798_v27, %v594_v28  ;;  %v601_v35 = vor.u32 %v807_v31, %v600_v29  ;;  %v744_v36 = vld [vmem:[%s1239_s1 + $0x118] sm:$0xf]  ;;  %v605_v38 = vor.u32 %v799_v32, %v602_v33  ;;  %v950_v39 = vld [vmem:[%s1240_s0] sm:$0xf]  ;;  %v833_v41 = vld [vmem:[%s1239_s1 + $0x11c] sm:$0xf] }
   0xa   :  { %346 = vmatpush.bf16.msra.mxu2 %v665_v22  ;;  %v841_v37 = vld [vmem:[%s1239_s1 + $0x154] sm:$0xf0]  ;;  %v746_v42 = vld [vmem:[%s1239_s1 + $0x158] sm:$0xf0]  ;;  %v736_v43 = vld [vmem:[%s1239_s1 + $0x110] sm:$0xf] }
   0xb   :  { %359 = vmatpush.bf16.msra.mxu3 %v669_v26  ;;  %v745_v40 = vor.u32 %v841_v37, %v744_v36  ;;  %v749_v44 = vor.u32 %v833_v41, %v746_v42  ;;  %v840_v45 = vld [vmem:[%s1239_s1 + $0x14c] sm:$0xf0]  ;;  %v832_v46 = vld [vmem:[%s1239_s1 + $0x114] sm:$0xf]  ;;  %v680_v48 = vld [vmem:[%s1239_s1 + $0x98] sm:$0xf] }
   0xc   :  { %v738_v47 = vld [vmem:[%s1239_s1 + $0x150] sm:$0xf0]  ;;  %v825_v49 = vld [vmem:[%s1239_s1 + $0xd4] sm:$0xf0]  ;;  %v817_v50 = vld [vmem:[%s1239_s1 + $0x9c] sm:$0xf]  ;;  %v737_v51 = vor.u32 %v840_v45, %v736_v43 }
   0xd   :  { %321 = vmatpush.bf16.msra.mxu0 %v593_v30  ;;  %334 = vmatpush.bf16.msra.mxu1 %v597_v34  ;;  %v682_v52 = vld [vmem:[%s1239_s1 + $0xd8] sm:$0xf0]  ;;  %v672_v53 = vld [vmem:[%s1239_s1 + $0x90] sm:$0xf]  ;;  %v741_v54 = vor.u32 %v832_v46, %v738_v47  ;;  %v681_v55 = vor.u32 %v825_v49, %v680_v48  ;;  %v816_v57 = vld [vmem:[%s1239_s1 + $0x94] sm:$0xf] }
   0xe   :  { %347 = vmatpush.bf16.msra.mxu2 %v601_v35  ;;  %v824_v56 = vld [vmem:[%s1239_s1 + $0xcc] sm:$0xf0]  ;;  %v674_v58 = vld [vmem:[%s1239_s1 + $0xd0] sm:$0xf0]  ;;  %v685_v59 = vor.u32 %v817_v50, %v682_v52  ;;  %v616_v60 = vld [vmem:[%s1239_s1 + $0x18] sm:$0xf] }
   0xf   :  { %360 = vmatpush.bf16.msra.mxu3 %v605_v38  ;;  %v809_v61 = vld [vmem:[%s1239_s1 + $0x54] sm:$0xf0]  ;;  %v801_v62 = vld [vmem:[%s1239_s1 + $0x1c] sm:$0xf]  ;;  %v608_v0 = vld [vmem:[%s1239_s1 + $0x10] sm:$0xf]  ;;  %v673_v2 = vor.u32 %v824_v56, %v672_v53  ;;  %v677_v7 = vor.u32 %v816_v57, %v674_v58 }
  0x10   :  { %782 = vmatmul.msk.bf16.vlgmr.msra.gmra.mxu0 %vm310_vm0, %v950_v39  ;;  %783 = vmatmul.msk.bf16.vlgmr.msra.gmra.mxu1 %vm310_vm0, %v950_v39  ;;  %v618_v63 = vld [vmem:[%s1239_s1 + $0x58] sm:$0xf0]  ;;  %v808_v1 = vld [vmem:[%s1239_s1 + $0x4c] sm:$0xf0]  ;;  %v800_v3 = vld [vmem:[%s1239_s1 + $0x14] sm:$0xf]  ;;  %v617_v8 = vor.u32 %v809_v61, %v616_v60 }
  0x11   :  { %784 = vmatmul.msk.bf16.vlgmr.msra.gmra.mxu2 %vm310_vm0, %v950_v39  ;;  %371 = vmatpush.bf16.msrb.mxu0 %v737_v51  ;;  %v610_v4 = vld [vmem:[%s1239_s1 + $0x50] sm:$0xf0]  ;;  %v64_v5 = vld [vmem:[%s1241_s2] sm:$0xff]  ;;  %v760_v6 = vld [vmem:[%s1239_s1 + $0x128] sm:$0xf]  ;;  %v621_v12 = vor.u32 %v801_v62, %v618_v63  ;;  %v609_v21 = vor.u32 %v808_v1, %v608_v0 }
  0x12   :  { %397 = vmatpush.bf16.msrb.mxu2 %v745_v40  ;;  %785 = vmatmul.msk.bf16.vlgmr.msra.gmra.mxu3 %vm310_vm0, %v950_v39  ;;  %v843_v9 = vld [vmem:[%s1239_s1 + $0x164] sm:$0xf0]  ;;  %v835_v10 = vld [vmem:[%s1239_s1 + $0x12c] sm:$0xf]  ;;  %v752_v14 = vld [vmem:[%s1239_s1 + $0x120] sm:$0xf]  ;;  %v613_v24 = vor.u32 %v800_v3, %v610_v4 }
  0x13   :  { %410 = vmatpush.bf16.msrb.mxu3 %v749_v44  ;;  %384 = vmatpush.bf16.msrb.mxu1 %v741_v54  ;;  %v762_v11 = vld [vmem:[%s1239_s1 + $0x168] sm:$0xf0]  ;;  %v761_v13 = vor.u32 %v843_v9, %v760_v6  ;;  %v842_v15 = vld [vmem:[%s1239_s1 + $0x15c] sm:$0xf0]  ;;  %v834_v16 = vld [vmem:[%s1239_s1 + $0x124] sm:$0xf] }
  0x14   :  { %67 = vperm.xlu0 %847, %v64_v5   ;;  %v765_v17 = vor.u32 %v835_v10, %v762_v11  ;;  %v754_v18 = vld [vmem:[%s1239_s1 + $0x160] sm:$0xf0]  ;;  %v696_v19 = vld [vmem:[%s1239_s1 + $0xa8] sm:$0xf]  ;;  %v819_v22 = vld [vmem:[%s1239_s1 + $0xac] sm:$0xf]  ;;  %v753_v25 = vor.u32 %v842_v15, %v752_v14 }
  0x15   :  { %v827_v20 = vld [vmem:[%s1239_s1 + $0xe4] sm:$0xf0]  ;;  %372 = vmatpush.bf16.msrb.mxu0 %v673_v2  ;;  %v698_v23 = vld [vmem:[%s1239_s1 + $0xe8] sm:$0xf0]  ;;  %v757_v26 = vor.u32 %v834_v16, %v754_v18  ;;  %v688_v28 = vld [vmem:[%s1239_s1 + $0xa0] sm:$0xf] }
  0x16   :  { %398 = vmatpush.bf16.msrb.mxu2 %v681_v55  ;;  %v697_v27 = vor.u32 %v827_v20, %v696_v19  ;;  %v826_v29 = vld [vmem:[%s1239_s1 + $0xdc] sm:$0xf0]  ;;  %v701_v30 = vor.u32 %v819_v22, %v698_v23  ;;  %v818_v31 = vld [vmem:[%s1239_s1 + $0xa4] sm:$0xf]  ;;  %v632_v33 = vld [vmem:[%s1239_s1 + $0x28] sm:$0xf] }
  0x17   :  { %411 = vmatpush.bf16.msrb.mxu3 %v685_v59  ;;  %385 = vmatpush.bf16.msrb.mxu1 %v677_v7  ;;  %v690_v32 = vld [vmem:[%s1239_s1 + $0xe0] sm:$0xf0]  ;;  %v811_v34 = vld [vmem:[%s1239_s1 + $0x64] sm:$0xf0]  ;;  %v689_v35 = vor.u32 %v826_v29, %v688_v28  ;;  %v803_v36 = vld [vmem:[%s1239_s1 + $0x2c] sm:$0xf] }
  0x18   :  { %v634_v37 = vld [vmem:[%s1239_s1 + $0x68] sm:$0xf0]  ;;  %v624_v38 = vld [vmem:[%s1239_s1 + $0x20] sm:$0xf]  ;;  %v693_v40 = vor.u32 %v818_v31, %v690_v32  ;;  %v802_v42 = vld [vmem:[%s1239_s1 + $0x24] sm:$0xf]  ;;  %v633_v47 = vor.u32 %v811_v34, %v632_v33 }
  0x19   :  { %373 = vmatpush.bf16.msrb.mxu0 %v609_v21  ;;  %v810_v41 = vld [vmem:[%s1239_s1 + $0x5c] sm:$0xf0]  ;;  %v626_v43 = vld [vmem:[%s1239_s1 + $0x60] sm:$0xf0]  ;;  %v776_v44 = vld [vmem:[%s1239_s1 + $0x138] sm:$0xf]  ;;  %v637_v51 = vor.u32 %v803_v36, %v634_v37 }
  0x1a   :  { %399 = vmatpush.bf16.msrb.mxu2 %v617_v8  ;;  %v845_v45 = vld [vmem:[%s1239_s1 + $0x174] sm:$0xf0]  ;;  %v837_v46 = vld [vmem:[%s1239_s1 + $0x13c] sm:$0xf]  ;;  %v768_v49 = vld [vmem:[%s1239_s1 + $0x130] sm:$0xf]  ;;  %v625_v52 = vor.u32 %v810_v41, %v624_v38  ;;  %v629_v55 = vor.u32 %v802_v42, %v626_v43 }
  0x1b   :  { %412 = vmatpush.bf16.msrb.mxu3 %v621_v12  ;;  %386 = vmatpush.bf16.msrb.mxu1 %v613_v24  ;;  %v778_v48 = vld [vmem:[%s1239_s1 + $0x178] sm:$0xf0]  ;;  %v844_v50 = vld [vmem:[%s1239_s1 + $0x16c] sm:$0xf0]  ;;  %v836_v53 = vld [vmem:[%s1239_s1 + $0x134] sm:$0xf]  ;;  %v777_v56 = vor.u32 %v845_v45, %v776_v44 }
  0x1c   :  { %v770_v54 = vld [vmem:[%s1239_s1 + $0x170] sm:$0xf0]  ;;  %v781_v57 = vor.u32 %v837_v46, %v778_v48  ;;  %v769_v58 = vor.u32 %v844_v50, %v768_v49  ;;  %v712_v59 = vld [vmem:[%s1239_s1 + $0xb8] sm:$0xf]  ;;  %v821_v61 = vld [vmem:[%s1239_s1 + $0xbc] sm:$0xf] }
  0x1d   :  { %423 = vmatpush.bf16.msra.mxu0 %v753_v25  ;;  %v829_v60 = vld [vmem:[%s1239_s1 + $0xf4] sm:$0xf0]  ;;  %v773_v62 = vor.u32 %v836_v53, %v770_v54  ;;  %v714_v63 = vld [vmem:[%s1239_s1 + $0xf8] sm:$0xf0]  ;;  %v704_v0 = vld [vmem:[%s1239_s1 + $0xb0] sm:$0xf] }
  0x1e   :  { %449 = vmatpush.bf16.msra.mxu2 %v761_v13  ;;  %v828_v1 = vld [vmem:[%s1239_s1 + $0xec] sm:$0xf0]  ;;  %v820_v2 = vld [vmem:[%s1239_s1 + $0xb4] sm:$0xf]  ;;  %v713_v4 = vor.u32 %v829_v60, %v712_v59  ;;  %v717_v5 = vor.u32 %v821_v61, %v714_v63  ;;  %v648_v7 = vld [vmem:[%s1239_s1 + $0x38] sm:$0xf] }
  0x1f   :  { %462 = vmatpush.bf16.msra.mxu3 %v765_v17  ;;  %436 = vmatpush.bf16.msra.mxu1 %v757_v26  ;;  %v706_v3 = vld [vmem:[%s1239_s1 + $0xf0] sm:$0xf0]  ;;  %v705_v6 = vor.u32 %v828_v1, %v704_v0  ;;  %v813_v8 = vld [vmem:[%s1239_s1 + $0x74] sm:$0xf0]  ;;  %v805_v9 = vld [vmem:[%s1239_s1 + $0x3c] sm:$0xf] }
  0x20   :  { %786 = vmatmul.msk.bf16.vlgmr.msrb.gmra.mxu0 %vm310_vm0, %v950_v39  ;;  %787 = vmatmul.msk.bf16.vlgmr.msrb.gmra.mxu1 %vm310_vm0, %v950_v39  ;;  %v709_v10 = vor.u32 %v820_v2, %v706_v3  ;;  %v650_v11 = vld [vmem:[%s1239_s1 + $0x78] sm:$0xf0]  ;;  %v640_v12 = vld [vmem:[%s1239_s1 + $0x30] sm:$0xf]  ;;  %v804_v14 = vld [vmem:[%s1239_s1 + $0x34] sm:$0xf]  ;;  %v649_v16 = vor.u32 %v813_v8, %v648_v7 }
  0x21   :  { %424 = vmatpush.bf16.msra.mxu0 %v689_v35  ;;  %788 = vmatmul.msk.bf16.vlgmr.msrb.gmra.mxu2 %vm310_vm0, %v950_v39  ;;  %v812_v13 = vld [vmem:[%s1239_s1 + $0x6c] sm:$0xf0]  ;;  %v642_v15 = vld [vmem:[%s1239_s1 + $0x70] sm:$0xf0]  ;;  %v653_v17 = vor.u32 %v805_v9, %v650_v11 }
  0x22   :  { %450 = vmatpush.bf16.msra.mxu2 %v697_v27  ;;  %789 = vmatmul.msk.bf16.vlgmr.msrb.gmra.mxu3 %vm310_vm0, %v950_v39  ;;  %v641_v18 = vor.u32 %v812_v13, %v640_v12  ;;  %v645_v19 = vor.u32 %v804_v14, %v642_v15 }
  0x23   :  { %463 = vmatpush.bf16.msra.mxu3 %v701_v30  ;;  %437 = vmatpush.bf16.msra.mxu1 %v693_v40 }
  0x25   :  { %425 = vmatpush.bf16.msra.mxu0 %v625_v52 }
  0x26   :  { %451 = vmatpush.bf16.msra.mxu2 %v633_v47 }
  0x27   :  { %464 = vmatpush.bf16.msra.mxu3 %v637_v51  ;;  %438 = vmatpush.bf16.msra.mxu1 %v629_v55 }
  0x29   :  { %475 = vmatpush.bf16.msrb.mxu0 %v769_v58 }
  0x2a   :  { %501 = vmatpush.bf16.msrb.mxu2 %v777_v56 }
  0x2b   :  { %514 = vmatpush.bf16.msrb.mxu3 %v781_v57  ;;  %488 = vmatpush.bf16.msrb.mxu1 %v773_v62 }
  0x2d   :  { %476 = vmatpush.bf16.msrb.mxu0 %v705_v6 }
  0x2e   :  { %502 = vmatpush.bf16.msrb.mxu2 %v713_v4 }
  0x2f   :  { %515 = vmatpush.bf16.msrb.mxu3 %v717_v5  ;;  %489 = vmatpush.bf16.msrb.mxu1 %v709_v10 }
  0x30   :  { %790 = vmatmul.msk.bf16.vlgmr.msra.gmra.mxu0 %vm310_vm0, %v950_v39  ;;  %791 = vmatmul.msk.bf16.vlgmr.msra.gmra.mxu1 %vm310_vm0, %v950_v39 }
  0x31   :  { %477 = vmatpush.bf16.msrb.mxu0 %v641_v18  ;;  %792 = vmatmul.msk.bf16.vlgmr.msra.gmra.mxu2 %vm310_vm0, %v950_v39 }
  0x32   :  { %503 = vmatpush.bf16.msrb.mxu2 %v649_v16  ;;  %793 = vmatmul.msk.bf16.vlgmr.msra.gmra.mxu3 %vm310_vm0, %v950_v39 }
  0x33   :  { %516 = vmatpush.bf16.msrb.mxu3 %v653_v17  ;;  %490 = vmatpush.bf16.msrb.mxu1 %v645_v19 }
  0x40   :  { %794 = vmatmul.msk.bf16.vlgmr.msrb.gmra.mxu0 %vm310_vm0, %v950_v39  ;;  %795 = vmatmul.msk.bf16.vlgmr.msrb.gmra.mxu1 %vm310_vm0, %v950_v39 }
  0x41   :  { %796 = vmatmul.msk.bf16.vlgmr.msrb.gmra.mxu2 %vm310_vm0, %v950_v39 }
  0x42   :  { %797 = vmatmul.msk.bf16.vlgmr.msrb.gmra.mxu3 %vm310_vm0, %v950_v39 }
  0x86   :  { %v1197_v20 = vpop.permute.xlu0 %67 }
  0x8d   :  { %v323_v21 = vpop.f32.mrf.mxu0  ;;  %v336_v22 = vpop.f32.mrf.mxu1 }
  0x8e   :  { %v324_v23 = vadd.f32 %v323_v21, %v1197_v20  ;;  %v337_v24 = vadd.f32 %v336_v22, %v1197_v20 }
  0x90   :  { %vm522_vm1 = vcmp.ge.f32.partialorder %v324_v23, 0.0  ;;  %v538_v25 = vmul.f32 0.2, %v324_v23  ;;  %vm523_vm2 = vcmp.ge.f32.partialorder %v337_v24, 0.0  ;;  %v539_v26 = vmul.f32 0.2, %v337_v24 }
  0x92   :  { %v554_v27 = vsel %vm522_vm1, %v324_v23, %v538_v25  ;;  %v555_v28 = vsel %vm523_vm2, %v337_v24, %v539_v26 }
  0x93   :  { %v570_v30 = vpack.c.bf16 %v555_v28, %v554_v27 }
  0x94   :  { %v349_v29 = vpop.f32.mrf.mxu2 }
  0x95   :  { %v350_v31 = vadd.f32 %v349_v29, %v1197_v20  ;;  %v362_v32 = vpop.f32.mrf.mxu3  ;;  %v325_v39 = vpop.f32.mrf.mxu0  ;;  %578 = vst [vmem:[%s1242_s3] sm:$0xff] %v570_v30 }
  0x96   :  { %v363_v33 = vadd.f32 %v362_v32, %v1197_v20  ;;  %v338_v34 = vpop.f32.mrf.mxu1 }
  0x97   :  { %vm524_vm3 = vcmp.ge.f32.partialorder %v350_v31, 0.0  ;;  %v540_v35 = vmul.f32 0.2, %v350_v31 }
  0x98   :  { %vm525_vm4 = vcmp.ge.f32.partialorder %v363_v33, 0.0  ;;  %v541_v36 = vmul.f32 0.2, %v363_v33 }
  0x99   :  { %v556_v37 = vsel %vm524_vm3, %v350_v31, %v540_v35 }
  0x9a   :  { %v557_v38 = vsel %vm525_vm4, %v363_v33, %v541_v36 }
  0x9b   :  { %v571_v40 = vpack.c.bf16 %v557_v38, %v556_v37 }
  0x9c   :  { %v351_v41 = vpop.f32.mrf.mxu2 }
  0x9d   :  { %579 = vst [vmem:[%s1242_s3 + $0x8] sm:$0xff] %v571_v40  ;;  %v364_v42 = vpop.f32.mrf.mxu3  ;;  %v375_v43 = vpop.f32.mrf.mxu0 }
  0x9e   :  { %v376_v44 = vadd.f32 %v375_v43, %v1197_v20  ;;  %v388_v45 = vpop.f32.mrf.mxu1 }
  0x9f   :  { %v389_v46 = vadd.f32 %v388_v45, %v1197_v20 }
  0xa0   :  { %vm526_vm5 = vcmp.ge.f32.partialorder %v376_v44, 0.0  ;;  %v542_v47 = vmul.f32 0.2, %v376_v44 }
  0xa1   :  { %vm527_vm6 = vcmp.ge.f32.partialorder %v389_v46, 0.0  ;;  %v543_v48 = vmul.f32 0.2, %v389_v46 }
  0xa2   :  { %v558_v49 = vsel %vm526_vm5, %v376_v44, %v542_v47 }
  0xa3   :  { %v559_v50 = vsel %vm527_vm6, %v389_v46, %v543_v48 }
  0xa4   :  { %v572_v51 = vpack.c.bf16 %v559_v50, %v558_v49  ;;  %v401_v52 = vpop.f32.mrf.mxu2 }
  0xa5   :  { %v402_v53 = vadd.f32 %v401_v52, %v1197_v20  ;;  %v414_v54 = vpop.f32.mrf.mxu3  ;;  %v377_v55 = vpop.f32.mrf.mxu0 }
  0xa6   :  { %580 = vst [vmem:[%s1242_s3 + $0x10] sm:$0xff] %v572_v51  ;;  %v415_v56 = vadd.f32 %v414_v54, %v1197_v20  ;;  %v390_v57 = vpop.f32.mrf.mxu1 }
  0xa7   :  { %vm528_vm7 = vcmp.ge.f32.partialorder %v402_v53, 0.0  ;;  %v544_v58 = vmul.f32 0.2, %v402_v53 }
  0xa8   :  { %vm529_vm8 = vcmp.ge.f32.partialorder %v415_v56, 0.0  ;;  %v545_v59 = vmul.f32 0.2, %v415_v56 }
  0xa9   :  { %v560_v60 = vsel %vm528_vm7, %v402_v53, %v544_v58 }
  0xaa   :  { %v561_v61 = vsel %vm529_vm8, %v415_v56, %v545_v59 }
  0xab   :  { %v573_v62 = vpack.c.bf16 %v561_v61, %v560_v60 }
  0xac   :  { %v403_v63 = vpop.f32.mrf.mxu2 }
  0xad   :  { %581 = vst [vmem:[%s1242_s3 + $0x18] sm:$0xff] %v573_v62  ;;  %v416_v0 = vpop.f32.mrf.mxu3  ;;  %v427_v1 = vpop.f32.mrf.mxu0 }
  0xae   :  { %v428_v2 = vadd.f32 %v427_v1, %v1197_v20  ;;  %v440_v3 = vpop.f32.mrf.mxu1 }
  0xaf   :  { %v441_v4 = vadd.f32 %v440_v3, %v1197_v20 }
  0xb0   :  { %vm530_vm9 = vcmp.ge.f32.partialorder %v428_v2, 0.0  ;;  %v546_v5 = vmul.f32 0.2, %v428_v2 }
  0xb1   :  { %vm531_vm10 = vcmp.ge.f32.partialorder %v441_v4, 0.0  ;;  %v547_v6 = vmul.f32 0.2, %v441_v4 }
  0xb2   :  { %v562_v7 = vsel %vm530_vm9, %v428_v2, %v546_v5 }
  0xb3   :  { %v563_v8 = vsel %vm531_vm10, %v441_v4, %v547_v6 }
  0xb4   :  { %v574_v9 = vpack.c.bf16 %v563_v8, %v562_v7  ;;  %v453_v10 = vpop.f32.mrf.mxu2 }
  0xb5   :  { %v454_v11 = vadd.f32 %v453_v10, %v1197_v20  ;;  %v466_v12 = vpop.f32.mrf.mxu3  ;;  %v429_v13 = vpop.f32.mrf.mxu0 }
  0xb6   :  { %582 = vst [vmem:[%s1242_s3 + $0x20] sm:$0xff] %v574_v9  ;;  %v467_v14 = vadd.f32 %v466_v12, %v1197_v20  ;;  %v442_v15 = vpop.f32.mrf.mxu1 }
  0xb7   :  { %vm532_vm11 = vcmp.ge.f32.partialorder %v454_v11, 0.0  ;;  %v548_v16 = vmul.f32 0.2, %v454_v11 }
  0xb8   :  { %vm533_vm12 = vcmp.ge.f32.partialorder %v467_v14, 0.0  ;;  %v549_v17 = vmul.f32 0.2, %v467_v14 }
  0xb9   :  { %v564_v18 = vsel %vm532_vm11, %v454_v11, %v548_v16 }
  0xba   :  { %v565_v19 = vsel %vm533_vm12, %v467_v14, %v549_v17 }
  0xbb   :  { %v575_v21 = vpack.c.bf16 %v565_v19, %v564_v18 }
  0xbc   :  { %v455_v22 = vpop.f32.mrf.mxu2 }
  0xbd   :  { %583 = vst [vmem:[%s1242_s3 + $0x28] sm:$0xff] %v575_v21  ;;  %v468_v23 = vpop.f32.mrf.mxu3  ;;  %v479_v24 = vpop.f32.mrf.mxu0 }
  0xbe   :  { %v480_v25 = vadd.f32 %v479_v24, %v1197_v20  ;;  %v492_v26 = vpop.f32.mrf.mxu1 }
  0xbf   :  { %v493_v27 = vadd.f32 %v492_v26, %v1197_v20 }
  0xc0   :  { %vm534_vm13 = vcmp.ge.f32.partialorder %v480_v25, 0.0  ;;  %v550_v28 = vmul.f32 0.2, %v480_v25 }
  0xc1   :  { %vm535_vm14 = vcmp.ge.f32.partialorder %v493_v27, 0.0  ;;  %v551_v29 = vmul.f32 0.2, %v493_v27 }
  0xc2   :  { %v566_v30 = vsel %vm534_vm13, %v480_v25, %v550_v28 }
  0xc3   :  { %v567_v31 = vsel %vm535_vm14, %v493_v27, %v551_v29 }
  0xc4   :  { %v576_v32 = vpack.c.bf16 %v567_v31, %v566_v30  ;;  %v505_v39 = vpop.f32.mrf.mxu2 }
  0xc5   :  { %v506_v33 = vadd.f32 %v505_v39, %v1197_v20  ;;  %v518_v34 = vpop.f32.mrf.mxu3  ;;  %v481_v35 = vpop.f32.mrf.mxu0 }
  0xc6   :  { %584 = vst [vmem:[%s1242_s3 + $0x30] sm:$0xff] %v576_v32  ;;  %v519_v36 = vadd.f32 %v518_v34, %v1197_v20  ;;  %v494_v37 = vpop.f32.mrf.mxu1 }
  0xc7   :  { %vm536_vm15 = vcmp.ge.f32.partialorder %v506_v33, 0.0  ;;  %v552_v38 = vmul.f32 0.2, %v506_v33 }
  0xc8   :  { %vm537_vm0 = vcmp.ge.f32.partialorder %v519_v36, 0.0  ;;  %v553_v40 = vmul.f32 0.2, %v519_v36 }
  0xc9   :  { %v568_v41 = vsel %vm536_vm15, %v506_v33, %v552_v38 }
  0xca   :  { %v569_v42 = vsel %vm537_vm0, %v519_v36, %v553_v40 }
  0xcb   :  { %v577_v43 = vpack.c.bf16 %v569_v42, %v568_v41 }
  0xcc   :  { %v507_v44 = vpop.f32.mrf.mxu2 }
  0xcd   :  { %585 = vst [vmem:[%s1242_s3 + $0x38] sm:$0xff] %v577_v43  ;;  %v520_v45 = vpop.f32.mrf.mxu3 }

// kernel: discriminator_forward.6
= control target key start
LH: loop header
LB: loop body
LE: loop exit
PB: predicated region body
PF: predicated region fallthrough
CT: control target
= control target key end

     0   :  { %s719_s1 = inlined_call_operand.vmem [shape: bf16[128,512], index: 1, kind: input, shape index: {}]   ;;  %s720_s2 = inlined_call_operand.vmem [shape: f32[16,1], index: 2, kind: input, shape index: {}]   ;;  %s721_s0 = inlined_call_operand.vmem [shape: bf16[16,128], index: 0, kind: input, shape index: {}]   ;;  %s722_s3 = inlined_call_operand.vmem [shape: bf16[16,512], index: 3, kind: output, shape index: {}]  }
   0x1   :  { %v436_v0 = vld [vmem:[%s719_s1 + $0xe0] sm:$0xf]  ;;  %v481_v1 = vld [vmem:[%s719_s1 + $0xec] sm:$0xf0]  ;;  %v479_v2 = vld [vmem:[%s719_s1 + $0xe4] sm:$0xf] }
   0x2   :  { %v437_v3 = vor.u32 %v481_v1, %v436_v0  ;;  %v438_v4 = vld [vmem:[%s719_s1 + $0xf0] sm:$0xf0]  ;;  %v444_v5 = vld [vmem:[%s719_s1 + $0xe8] sm:$0xf]  ;;  %v482_v6 = vld [vmem:[%s719_s1 + $0xf4] sm:$0xf0] }
   0x3   :  { %v441_v7 = vor.u32 %v479_v2, %v438_v4  ;;  %v445_v8 = vor.u32 %v482_v6, %v444_v5  ;;  %v480_v9 = vld [vmem:[%s719_s1 + $0xec] sm:$0xf]  ;;  %v446_v10 = vld [vmem:[%s719_s1 + $0xf8] sm:$0xf0]  ;;  %v420_v11 = vld [vmem:[%s719_s1 + $0xc0] sm:$0xf] }
   0x4   :  { %226 = vmatpush.bf16.msra.mxu0 %v437_v3  ;;  %v449_v12 = vor.u32 %v480_v9, %v446_v10  ;;  %v477_v13 = vld [vmem:[%s719_s1 + $0xcc] sm:$0xf0]  ;;  %v475_v14 = vld [vmem:[%s719_s1 + $0xc4] sm:$0xf]  ;;  %v422_v15 = vld [vmem:[%s719_s1 + $0xd0] sm:$0xf0] }
   0x5   :  { %240 = vmatpush.bf16.msra.mxu1 %v441_v7  ;;  %254 = vmatpush.bf16.msra.mxu2 %v445_v8  ;;  %v421_v16 = vor.u32 %v477_v13, %v420_v11  ;;  %v425_v17 = vor.u32 %v475_v14, %v422_v15  ;;  %v428_v18 = vld [vmem:[%s719_s1 + $0xc8] sm:$0xf]  ;;  %v478_v19 = vld [vmem:[%s719_s1 + $0xd4] sm:$0xf0]  ;;  %v476_v20 = vld [vmem:[%s719_s1 + $0xcc] sm:$0xf] }
   0x6   :  { %268 = vmatpush.bf16.msra.mxu3 %v449_v12  ;;  %v429_v21 = vor.u32 %v478_v19, %v428_v18  ;;  %v430_v22 = vld [vmem:[%s719_s1 + $0xd8] sm:$0xf0]  ;;  %v404_v23 = vld [vmem:[%s719_s1 + $0xa0] sm:$0xf]  ;;  %v473_v24 = vld [vmem:[%s719_s1 + $0xac] sm:$0xf0] }
   0x7   :  { %v433_v25 = vor.u32 %v476_v20, %v430_v22  ;;  %v471_v26 = vld [vmem:[%s719_s1 + $0xa4] sm:$0xf]  ;;  %v406_v27 = vld [vmem:[%s719_s1 + $0xb0] sm:$0xf0]  ;;  %v412_v28 = vld [vmem:[%s719_s1 + $0xa8] sm:$0xf]  ;;  %v405_v29 = vor.u32 %v473_v24, %v404_v23 }
   0x8   :  { %227 = vmatpush.bf16.msra.mxu0 %v421_v16  ;;  %v474_v30 = vld [vmem:[%s719_s1 + $0xb4] sm:$0xf0]  ;;  %v472_v31 = vld [vmem:[%s719_s1 + $0xac] sm:$0xf]  ;;  %v414_v32 = vld [vmem:[%s719_s1 + $0xb8] sm:$0xf0]  ;;  %v409_v33 = vor.u32 %v471_v26, %v406_v27 }
   0x9   :  { %241 = vmatpush.bf16.msra.mxu1 %v425_v17  ;;  %255 = vmatpush.bf16.msra.mxu2 %v429_v21  ;;  %v413_v34 = vor.u32 %v474_v30, %v412_v28  ;;  %v388_v35 = vld [vmem:[%s719_s1 + $0x80] sm:$0xf]  ;;  %v469_v36 = vld [vmem:[%s719_s1 + $0x8c] sm:$0xf0]  ;;  %v467_v37 = vld [vmem:[%s719_s1 + $0x84] sm:$0xf]  ;;  %v417_v38 = vor.u32 %v472_v31, %v414_v32 }
   0xa   :  { %269 = vmatpush.bf16.msra.mxu3 %v433_v25  ;;  %v390_v39 = vld [vmem:[%s719_s1 + $0x90] sm:$0xf0]  ;;  %v396_v40 = vld [vmem:[%s719_s1 + $0x88] sm:$0xf]  ;;  %v470_v41 = vld [vmem:[%s719_s1 + $0x94] sm:$0xf0]  ;;  %v389_v44 = vor.u32 %v469_v36, %v388_v35 }
   0xb   :  { %v468_v42 = vld [vmem:[%s719_s1 + $0x8c] sm:$0xf]  ;;  %v398_v43 = vld [vmem:[%s719_s1 + $0x98] sm:$0xf0]  ;;  %v393_v45 = vor.u32 %v467_v37, %v390_v39  ;;  %v397_v46 = vor.u32 %v470_v41, %v396_v40  ;;  %v372_v47 = vld [vmem:[%s719_s1 + $0x60] sm:$0xf] }
   0xc   :  { %228 = vmatpush.bf16.msra.mxu0 %v405_v29  ;;  %v465_v48 = vld [vmem:[%s719_s1 + $0x6c] sm:$0xf0]  ;;  %v463_v49 = vld [vmem:[%s719_s1 + $0x64] sm:$0xf]  ;;  %v401_v50 = vor.u32 %v468_v42, %v398_v43  ;;  %v374_v51 = vld [vmem:[%s719_s1 + $0x70] sm:$0xf0] }
   0xd   :  { %242 = vmatpush.bf16.msra.mxu1 %v409_v33  ;;  %256 = vmatpush.bf16.msra.mxu2 %v413_v34  ;;  %v380_v52 = vld [vmem:[%s719_s1 + $0x68] sm:$0xf]  ;;  %v466_v53 = vld [vmem:[%s719_s1 + $0x74] sm:$0xf0]  ;;  %v464_v54 = vld [vmem:[%s719_s1 + $0x6c] sm:$0xf]  ;;  %v373_v56 = vor.u32 %v465_v48, %v372_v47  ;;  %v377_v57 = vor.u32 %v463_v49, %v374_v51 }
   0xe   :  { %270 = vmatpush.bf16.msra.mxu3 %v417_v38  ;;  %v382_v55 = vld [vmem:[%s719_s1 + $0x78] sm:$0xf0]  ;;  %v381_v58 = vor.u32 %v466_v53, %v380_v52  ;;  %v356_v59 = vld [vmem:[%s719_s1 + $0x40] sm:$0xf]  ;;  %v461_v60 = vld [vmem:[%s719_s1 + $0x4c] sm:$0xf0] }
   0xf   :  { %v459_v61 = vld [vmem:[%s719_s1 + $0x44] sm:$0xf]  ;;  %v385_v62 = vor.u32 %v464_v54, %v382_v55  ;;  %v358_v63 = vld [vmem:[%s719_s1 + $0x50] sm:$0xf0]  ;;  %v364_v0 = vld [vmem:[%s719_s1 + $0x48] sm:$0xf]  ;;  %v357_v4 = vor.u32 %v461_v60, %v356_v59 }
  0x10   :  { %229 = vmatpush.bf16.msra.mxu0 %v389_v44  ;;  %v462_v1 = vld [vmem:[%s719_s1 + $0x54] sm:$0xf0]  ;;  %v460_v2 = vld [vmem:[%s719_s1 + $0x4c] sm:$0xf]  ;;  %v366_v3 = vld [vmem:[%s719_s1 + $0x58] sm:$0xf0]  ;;  %v361_v6 = vor.u32 %v459_v61, %v358_v63 }
  0x11   :  { %243 = vmatpush.bf16.msra.mxu1 %v393_v45  ;;  %257 = vmatpush.bf16.msra.mxu2 %v397_v46  ;;  %v340_v5 = vld [vmem:[%s719_s1 + $0x20] sm:$0xf]  ;;  %v365_v7 = vor.u32 %v462_v1, %v364_v0  ;;  %v457_v8 = vld [vmem:[%s719_s1 + $0x2c] sm:$0xf0]  ;;  %v455_v9 = vld [vmem:[%s719_s1 + $0x24] sm:$0xf]  ;;  %v369_v11 = vor.u32 %v460_v2, %v366_v3 }
  0x12   :  { %271 = vmatpush.bf16.msra.mxu3 %v401_v50  ;;  %v342_v10 = vld [vmem:[%s719_s1 + $0x30] sm:$0xf0]  ;;  %v348_v12 = vld [vmem:[%s719_s1 + $0x28] sm:$0xf]  ;;  %v458_v13 = vld [vmem:[%s719_s1 + $0x34] sm:$0xf0]  ;;  %v341_v18 = vor.u32 %v457_v8, %v340_v5 }
  0x13   :  { %v48_v14 = vld [vmem:[%s720_s2] sm:$0xff]  ;;  %v456_v15 = vld [vmem:[%s719_s1 + $0x2c] sm:$0xf]  ;;  %v350_v16 = vld [vmem:[%s719_s1 + $0x38] sm:$0xf0]  ;;  %v485_v17 = vmov 0   ;;  %v345_v19 = vor.u32 %v455_v9, %v342_v10  ;;  %v349_v20 = vor.u32 %v458_v13, %v348_v12 }
  0x14   :  { %230 = vmatpush.bf16.msra.mxu0 %v373_v56  ;;  %484 = vset.pattern.permute.xlu0 %v485_v17  ;;  %v324_v21 = vld [vmem:[%s719_s1] sm:$0xf]  ;;  %v453_v22 = vld [vmem:[%s719_s1 + $0xc] sm:$0xf0]  ;;  %v451_v23 = vld [vmem:[%s719_s1 + $0x4] sm:$0xf]  ;;  %v353_v24 = vor.u32 %v456_v15, %v350_v16 }
  0x15   :  { %244 = vmatpush.bf16.msra.mxu1 %v377_v57  ;;  %258 = vmatpush.bf16.msra.mxu2 %v381_v58  ;;  %v326_v25 = vld [vmem:[%s719_s1 + $0x10] sm:$0xf0]  ;;  %v332_v26 = vld [vmem:[%s719_s1 + $0x8] sm:$0xf]  ;;  %v454_v27 = vld [vmem:[%s719_s1 + $0x14] sm:$0xf0]  ;;  %v325_v30 = vor.u32 %v453_v22, %v324_v21 }
  0x16   :  { %272 = vmatpush.bf16.msra.mxu3 %v385_v62  ;;  %52 = vperm.xlu0 %484, %v48_v14   ;;  %v452_v28 = vld [vmem:[%s719_s1 + $0xc] sm:$0xf]  ;;  %v334_v29 = vld [vmem:[%s719_s1 + $0x18] sm:$0xf0]  ;;  %v329_v31 = vor.u32 %v451_v23, %v326_v25  ;;  %v333_v32 = vor.u32 %v454_v27, %v332_v26  ;;  %v450_v35 = vld [vmem:[%s721_s0] sm:$0xff] }
  0x17   :  { %v49_v33 = vld [vmem:[%s720_s2 + $0x8] sm:$0xff]  ;;  %v337_v34 = vor.u32 %v452_v28, %v334_v29 }
  0x18   :  { %231 = vmatpush.bf16.msra.mxu0 %v357_v4 }
  0x19   :  { %245 = vmatpush.bf16.msra.mxu1 %v361_v6  ;;  %259 = vmatpush.bf16.msra.mxu2 %v365_v7 }
  0x1a   :  { %273 = vmatpush.bf16.msra.mxu3 %v369_v11 }
  0x1c   :  { %232 = vmatpush.bf16.msra.mxu0 %v341_v18 }
  0x1d   :  { %246 = vmatpush.bf16.msra.mxu1 %v345_v19  ;;  %260 = vmatpush.bf16.msra.mxu2 %v349_v20 }
  0x1e   :  { %274 = vmatpush.bf16.msra.mxu3 %v353_v24  ;;  %57 = vperm.xlu0 %484, %v49_v33  }
  0x20   :  { %233 = vmatpush.bf16.msra.mxu0 %v325_v30 }
  0x21   :  { %247 = vmatpush.bf16.msra.mxu1 %v329_v31  ;;  %261 = vmatpush.bf16.msra.mxu2 %v333_v32 }
  0x22   :  { %275 = vmatpush.bf16.msra.mxu3 %v337_v34 }
  0x23   :  { %234 = vmatmul.bf16.vlgmr.msra.gmra.mxu0 %v450_v35 }
  0x24   :  { %248 = vmatmul.bf16.vlgmr.msra.gmra.mxu1 %v450_v35  ;;  %262 = vmatmul.bf16.vlgmr.msra.gmra.mxu2 %v450_v35 }
  0x25   :  { %276 = vmatmul.bf16.vlgmr.msra.gmra.mxu3 %v450_v35 }
  0x88   :  { %v53_v36 = vpop.permute.xlu0 %52 }
  0x90   :  { %v58_v46 = vpop.permute.xlu0 %57 }
  0xa0   :  { %v235_v37 = vpop.f32.mrf.mxu0 }
  0xa1   :  { %v236_v38 = vadd.f32 %v235_v37, %v53_v36  ;;  %v249_v39 = vpop.f32.mrf.mxu1 }
  0xa2   :  { %v250_v40 = vadd.f32 %v249_v39, %v53_v36 }
  0xa3   :  { %vm282_vm0 = vcmp.ge.f32.partialorder %v236_v38, 0.0  ;;  %v290_v41 = vmul.f32 0.2, %v236_v38 }
  0xa4   :  { %vm283_vm1 = vcmp.ge.f32.partialorder %v250_v40, 0.0  ;;  %v291_v42 = vmul.f32 0.2, %v250_v40 }
  0xa5   :  { %v298_v43 = vsel %vm282_vm0, %v236_v38, %v290_v41 }
  0xa6   :  { %v299_v44 = vsel %vm283_vm1, %v250_v40, %v291_v42 }
  0xa7   :  { %v306_v45 = vpack.c.bf16 %v299_v44, %v298_v43  ;;  %v263_v47 = vpop.f32.mrf.mxu2 }
  0xa8   :  { %v264_v48 = vadd.f32 %v263_v47, %v53_v36  ;;  %v277_v49 = vpop.f32.mrf.mxu3  ;;  %v237_v50 = vpop.f32.mrf.mxu0 }
  0xa9   :  { %310 = vst [vmem:[%s722_s3] sm:$0xff] %v306_v45  ;;  %v278_v51 = vadd.f32 %v277_v49, %v53_v36  ;;  %v238_v52 = vadd.f32 %v237_v50, %v58_v46  ;;  %v251_v53 = vpop.f32.mrf.mxu1 }
  0xaa   :  { %vm284_vm2 = vcmp.ge.f32.partialorder %v264_v48, 0.0  ;;  %v292_v54 = vmul.f32 0.2, %v264_v48  ;;  %v252_v55 = vadd.f32 %v251_v53, %v58_v46 }
  0xab   :  { %vm285_vm3 = vcmp.ge.f32.partialorder %v278_v51, 0.0  ;;  %v293_v56 = vmul.f32 0.2, %v278_v51  ;;  %vm286_vm4 = vcmp.ge.f32.partialorder %v238_v52, 0.0  ;;  %v294_v57 = vmul.f32 0.2, %v238_v52 }
  0xac   :  { %v300_v58 = vsel %vm284_vm2, %v264_v48, %v292_v54  ;;  %vm287_vm5 = vcmp.ge.f32.partialorder %v252_v55, 0.0  ;;  %v295_v59 = vmul.f32 0.2, %v252_v55 }
  0xad   :  { %v301_v60 = vsel %vm285_vm3, %v278_v51, %v293_v56  ;;  %v302_v61 = vsel %vm286_vm4, %v238_v52, %v294_v57 }
  0xae   :  { %v307_v62 = vpack.c.bf16 %v301_v60, %v300_v58  ;;  %v303_v63 = vsel %vm287_vm5, %v252_v55, %v295_v59 }
  0xaf   :  { %v308_v0 = vpack.c.bf16 %v303_v63, %v302_v61  ;;  %v265_v1 = vpop.f32.mrf.mxu2 }
  0xb0   :  { %311 = vst [vmem:[%s722_s3 + $0x8] sm:$0xff] %v307_v62  ;;  %v266_v2 = vadd.f32 %v265_v1, %v58_v46  ;;  %v279_v3 = vpop.f32.mrf.mxu3 }
  0xb1   :  { %312 = vst [vmem:[%s722_s3 + $0x10] sm:$0xff] %v308_v0  ;;  %v280_v4 = vadd.f32 %v279_v3, %v58_v46 }
  0xb2   :  { %vm288_vm6 = vcmp.ge.f32.partialorder %v266_v2, 0.0  ;;  %v296_v5 = vmul.f32 0.2, %v266_v2 }
  0xb3   :  { %vm289_vm7 = vcmp.ge.f32.partialorder %v280_v4, 0.0  ;;  %v297_v6 = vmul.f32 0.2, %v280_v4 }
  0xb4   :  { %v304_v7 = vsel %vm288_vm6, %v266_v2, %v296_v5 }
  0xb5   :  { %v305_v8 = vsel %vm289_vm7, %v280_v4, %v297_v6 }
  0xb6   :  { %v309_v9 = vpack.c.bf16 %v305_v8, %v304_v7 }
  0xb8   :  { %313 = vst [vmem:[%s722_s3 + $0x18] sm:$0xff] %v309_v9 }

// kernel: discriminator_forward.7
= control target key start
LH: loop header
LB: loop body
LE: loop exit
PB: predicated region body
PF: predicated region fallthrough
CT: control target
= control target key end

     0   :  { %vm404_vm1 = vcmask 257024   ;;  %s851_s1 = inlined_call_operand.vmem [shape: bf16[256,32], index: 1, kind: input, shape index: {}]   ;;  %s852_s2 = inlined_call_operand.vmem [shape: f32[1,32], index: 2, kind: input, shape index: {}]   ;;  %s853_s0 = inlined_call_operand.vmem [shape: bf16[128,256], index: 0, kind: input, shape index: {}]   ;;  %s854_s3 = inlined_call_operand.vmem [shape: bf16[128,32], index: 3, kind: output, shape index: {}]  }
   0x1   :  { %v576_v0 = vld [vmem:[%s851_s1 + $0x38] sm:$0xff]  ;;  %v575_v2 = vld [vmem:[%s851_s1 + $0x30] sm:$0xff]  ;;  %v574_v4 = vld [vmem:[%s851_s1 + $0x28] sm:$0xff] }
   0x2   :  { %v584_v1 = vld [vmem:[%s851_s1 + $0x78] sm:$0xff]  ;;  %242 = vmatpush.bf16.msra.mxu0 %v576_v0  ;;  %585 = vmatpush.bf16.msra.mxu2 %v576_v0  ;;  %v583_v3 = vld [vmem:[%s851_s1 + $0x70] sm:$0xff]  ;;  %v582_v5 = vld [vmem:[%s851_s1 + $0x68] sm:$0xff] }
   0x3   :  { %291 = vmatpush.bf16.msra.mxu1 %v584_v1  ;;  %593 = vmatpush.bf16.msra.mxu3 %v584_v1  ;;  %v573_v6 = vld [vmem:[%s851_s1 + $0x20] sm:$0xff]  ;;  %v572_v8 = vld [vmem:[%s851_s1 + $0x18] sm:$0xff]  ;;  %v571_v10 = vld [vmem:[%s851_s1 + $0x10] sm:$0xff] }
   0x4   :  { %v581_v7 = vld [vmem:[%s851_s1 + $0x60] sm:$0xff]  ;;  %v580_v9 = vld [vmem:[%s851_s1 + $0x58] sm:$0xff]  ;;  %v579_v11 = vld [vmem:[%s851_s1 + $0x50] sm:$0xff] }
   0x5   :  { %v570_v12 = vld [vmem:[%s851_s1 + $0x8] sm:$0xff]  ;;  %v569_v14 = vld [vmem:[%s851_s1] sm:$0xff]  ;;  %v435_v28 = vld [vmem:[%s853_s0 + $0x10] sm:$0xf] }
   0x6   :  { %243 = vmatpush.bf16.msra.mxu0 %v575_v2  ;;  %586 = vmatpush.bf16.msra.mxu2 %v575_v2  ;;  %v578_v13 = vld [vmem:[%s851_s1 + $0x48] sm:$0xff]  ;;  %v577_v15 = vld [vmem:[%s851_s1 + $0x40] sm:$0xff]  ;;  %v556_v29 = vld [vmem:[%s853_s0 + $0x14] sm:$0xf0] }
   0x7   :  { %292 = vmatpush.bf16.msra.mxu1 %v583_v3  ;;  %594 = vmatpush.bf16.msra.mxu3 %v583_v3  ;;  %v427_v16 = vld [vmem:[%s853_s0] sm:$0xf]  ;;  %v554_v17 = vld [vmem:[%s853_s0 + $0x4] sm:$0xf0]  ;;  %v553_v20 = vld [vmem:[%s853_s0 + $0x4] sm:$0xf]  ;;  %v436_v36 = vor.u32 %v556_v29, %v435_v28 }
   0x8   :  { %v459_v18 = vld [vmem:[%s853_s0 + $0x40] sm:$0xf]  ;;  %v562_v19 = vld [vmem:[%s853_s0 + $0x44] sm:$0xf0]  ;;  %v429_v21 = vld [vmem:[%s853_s0 + $0x8] sm:$0xf0]  ;;  %v428_v24 = vor.u32 %v554_v17, %v427_v16 }
   0x9   :  { %v561_v22 = vld [vmem:[%s853_s0 + $0x44] sm:$0xf]  ;;  %v461_v23 = vld [vmem:[%s853_s0 + $0x48] sm:$0xf0]  ;;  %v460_v25 = vor.u32 %v562_v19, %v459_v18  ;;  %v432_v26 = vor.u32 %v553_v20, %v429_v21  ;;  %v467_v30 = vld [vmem:[%s853_s0 + $0x50] sm:$0xf] }
   0xa   :  { %244 = vmatpush.bf16.msra.mxu0 %v574_v4  ;;  %587 = vmatpush.bf16.msra.mxu2 %v574_v4  ;;  %v464_v27 = vor.u32 %v561_v22, %v461_v23  ;;  %v564_v31 = vld [vmem:[%s853_s0 + $0x54] sm:$0xf0]  ;;  %v555_v32 = vld [vmem:[%s853_s0 + $0x14] sm:$0xf]  ;;  %v437_v33 = vld [vmem:[%s853_s0 + $0x18] sm:$0xf0] }
   0xb   :  { %293 = vmatpush.bf16.msra.mxu1 %v582_v5  ;;  %595 = vmatpush.bf16.msra.mxu3 %v582_v5  ;;  %v563_v34 = vld [vmem:[%s853_s0 + $0x54] sm:$0xf]  ;;  %v469_v35 = vld [vmem:[%s853_s0 + $0x58] sm:$0xf0]  ;;  %v468_v37 = vor.u32 %v564_v31, %v467_v30  ;;  %v440_v38 = vor.u32 %v555_v32, %v437_v33  ;;  %v443_v40 = vld [vmem:[%s853_s0 + $0x20] sm:$0xf] }
   0xc   :  { %v472_v39 = vor.u32 %v563_v34, %v469_v35  ;;  %v558_v41 = vld [vmem:[%s853_s0 + $0x24] sm:$0xf0]  ;;  %v475_v42 = vld [vmem:[%s853_s0 + $0x60] sm:$0xf]  ;;  %v557_v44 = vld [vmem:[%s853_s0 + $0x24] sm:$0xf] }
   0xd   :  { %v566_v43 = vld [vmem:[%s853_s0 + $0x64] sm:$0xf0]  ;;  %v445_v45 = vld [vmem:[%s853_s0 + $0x28] sm:$0xf0]  ;;  %v565_v46 = vld [vmem:[%s853_s0 + $0x64] sm:$0xf]  ;;  %v444_v48 = vor.u32 %v558_v41, %v443_v40 }
   0xe   :  { %245 = vmatpush.bf16.msra.mxu0 %v573_v6  ;;  %588 = vmatpush.bf16.msra.mxu2 %v573_v6  ;;  %v477_v47 = vld [vmem:[%s853_s0 + $0x68] sm:$0xf0]  ;;  %v476_v49 = vor.u32 %v566_v43, %v475_v42  ;;  %v448_v50 = vor.u32 %v557_v44, %v445_v45  ;;  %v451_v52 = vld [vmem:[%s853_s0 + $0x30] sm:$0xf]  ;;  %v560_v53 = vld [vmem:[%s853_s0 + $0x34] sm:$0xf0] }
   0xf   :  { %294 = vmatpush.bf16.msra.mxu1 %v581_v7  ;;  %596 = vmatpush.bf16.msra.mxu3 %v581_v7  ;;  %v480_v51 = vor.u32 %v565_v46, %v477_v47  ;;  %v483_v54 = vld [vmem:[%s853_s0 + $0x70] sm:$0xf]  ;;  %v568_v55 = vld [vmem:[%s853_s0 + $0x74] sm:$0xf0]  ;;  %v559_v56 = vld [vmem:[%s853_s0 + $0x34] sm:$0xf]  ;;  %v452_v60 = vor.u32 %v560_v53, %v451_v52 }
  0x10   :  { %v453_v57 = vld [vmem:[%s853_s0 + $0x38] sm:$0xf0]  ;;  %v567_v58 = vld [vmem:[%s853_s0 + $0x74] sm:$0xf]  ;;  %v484_v61 = vor.u32 %v568_v55, %v483_v54  ;;  %v769_v0 = vld [vmem:[%s852_s2] ss:$0 sm:$0xff] }
  0x11   :  { %v485_v59 = vld [vmem:[%s853_s0 + $0x78] sm:$0xf0]  ;;  %v456_v62 = vor.u32 %v559_v56, %v453_v57 }
  0x12   :  { %246 = vmatpush.bf16.msra.mxu0 %v572_v8  ;;  %589 = vmatpush.bf16.msra.mxu2 %v572_v8  ;;  %v488_v63 = vor.u32 %v567_v58, %v485_v59 }
  0x13   :  { %295 = vmatpush.bf16.msra.mxu1 %v580_v9  ;;  %597 = vmatpush.bf16.msra.mxu3 %v580_v9 }
  0x16   :  { %247 = vmatpush.bf16.msra.mxu0 %v571_v10  ;;  %590 = vmatpush.bf16.msra.mxu2 %v571_v10 }
  0x17   :  { %296 = vmatpush.bf16.msra.mxu1 %v579_v11  ;;  %598 = vmatpush.bf16.msra.mxu3 %v579_v11 }
  0x1a   :  { %248 = vmatpush.bf16.msra.mxu0 %v570_v12  ;;  %591 = vmatpush.bf16.msra.mxu2 %v570_v12 }
  0x1b   :  { %297 = vmatpush.bf16.msra.mxu1 %v578_v13  ;;  %599 = vmatpush.bf16.msra.mxu3 %v578_v13 }
  0x1e   :  { %249 = vmatpush.bf16.msra.mxu0 %v569_v14  ;;  %592 = vmatpush.bf16.msra.mxu2 %v569_v14 }
  0x1f   :  { %298 = vmatpush.bf16.msra.mxu1 %v577_v15  ;;  %600 = vmatpush.bf16.msra.mxu3 %v577_v15 }
  0x21   :  { %250 = vmatmul.bf16.vlgmr.msra.gmra.mxu0 %v428_v24  ;;  %270 = vmatmul.bf16.vlgmr.msra.gmra.mxu2 %v460_v25 }
  0x22   :  { %299 = vmatmul.bf16.vlgmr.msra.gmra.mxu1 %v432_v26  ;;  %319 = vmatmul.bf16.vlgmr.msra.gmra.mxu3 %v464_v27 }
  0x31   :  { %255 = vmatmul.bf16.gmra.mxu0 %v436_v36  ;;  %275 = vmatmul.bf16.gmra.mxu2 %v468_v37 }
  0x32   :  { %304 = vmatmul.bf16.gmra.mxu1 %v440_v38  ;;  %324 = vmatmul.bf16.gmra.mxu3 %v472_v39 }
  0x41   :  { %260 = vmatmul.bf16.gmra.mxu0 %v444_v48  ;;  %280 = vmatmul.bf16.gmra.mxu2 %v476_v49 }
  0x42   :  { %309 = vmatmul.bf16.gmra.mxu1 %v448_v50  ;;  %329 = vmatmul.bf16.gmra.mxu3 %v480_v51 }
  0x51   :  { %265 = vmatmul.bf16.gmra.mxu0 %v452_v60  ;;  %285 = vmatmul.bf16.gmra.mxu2 %v484_v61 }
  0x52   :  { %314 = vmatmul.bf16.gmra.mxu1 %v456_v62  ;;  %334 = vmatmul.bf16.gmra.mxu3 %v488_v63 }
  0x9e   :  { %v251_v1 = vpop.f32.mrf.mxu0 }
  0x9f   :  { %v252_v2 = vadd.f32 %v769_v0, %v251_v1  ;;  %v300_v3 = vpop.f32.mrf.mxu1 }
  0xa1   :  { %v301_v4 = vadd.f32 %v300_v3, %v252_v2 }
  0xa3   :  { %vm340_vm0 = vcmp.ge.f32.partialorder %v301_v4, 0.0  ;;  %v356_v5 = vmul.f32 0.2, %v301_v4 }
  0xa4   :  { %v271_v6 = vpop.f32.mrf.mxu2 }
  0xa5   :  { %v372_v7 = vsel %vm340_vm0, %v301_v4, %v356_v5  ;;  %v272_v8 = vadd.f32 %v769_v0, %v271_v6  ;;  %v320_v9 = vpop.f32.mrf.mxu3 }
  0xa6   :  { %v388_v10 = vpack.c.bf16 %v372_v7, %v372_v7  ;;  %v253_v11 = vpop.f32.mrf.mxu0 }
  0xa7   :  { %v321_v12 = vadd.f32 %v320_v9, %v272_v8  ;;  %v254_v13 = vadd.f32 %v769_v0, %v253_v11  ;;  %v302_v14 = vpop.f32.mrf.mxu1 }
  0xa8   :  { %405 = vst.msk [vmem:[%s854_s3] sm:$0xf] %vm404_vm1, %v388_v10 }
  0xa9   :  { %vm348_vm2 = vcmp.ge.f32.partialorder %v321_v12, 0.0  ;;  %v364_v15 = vmul.f32 0.2, %v321_v12  ;;  %v303_v16 = vadd.f32 %v302_v14, %v254_v13 }
  0xab   :  { %v380_v17 = vsel %vm348_vm2, %v321_v12, %v364_v15  ;;  %vm341_vm3 = vcmp.ge.f32.partialorder %v303_v16, 0.0  ;;  %v357_v18 = vmul.f32 0.2, %v303_v16 }
  0xac   :  { %v396_v19 = vpack.c.bf16 %v380_v17, %v380_v17  ;;  %v273_v20 = vpop.f32.mrf.mxu2 }
  0xad   :  { %v373_v21 = vsel %vm341_vm3, %v303_v16, %v357_v18  ;;  %v274_v22 = vadd.f32 %v769_v0, %v273_v20  ;;  %v322_v23 = vpop.f32.mrf.mxu3 }
  0xae   :  { %413 = vst.msk [vmem:[%s854_s3 + $0x20] sm:$0xf] %vm404_vm1, %v396_v19  ;;  %v389_v24 = vpack.c.bf16 %v373_v21, %v373_v21  ;;  %v256_v25 = vpop.f32.mrf.mxu0 }
  0xaf   :  { %v323_v26 = vadd.f32 %v322_v23, %v274_v22  ;;  %v257_v27 = vadd.f32 %v769_v0, %v256_v25  ;;  %v305_v28 = vpop.f32.mrf.mxu1 }
  0xb0   :  { %406 = vst.msk [vmem:[%s854_s3 + $0x4] sm:$0xf] %vm404_vm1, %v389_v24 }
  0xb1   :  { %vm349_vm4 = vcmp.ge.f32.partialorder %v323_v26, 0.0  ;;  %v365_v29 = vmul.f32 0.2, %v323_v26  ;;  %v306_v30 = vadd.f32 %v305_v28, %v257_v27 }
  0xb3   :  { %v381_v31 = vsel %vm349_vm4, %v323_v26, %v365_v29  ;;  %vm342_vm5 = vcmp.ge.f32.partialorder %v306_v30, 0.0  ;;  %v358_v32 = vmul.f32 0.2, %v306_v30 }
  0xb4   :  { %v397_v33 = vpack.c.bf16 %v381_v31, %v381_v31  ;;  %v276_v34 = vpop.f32.mrf.mxu2 }
  0xb5   :  { %v374_v35 = vsel %vm342_vm5, %v306_v30, %v358_v32  ;;  %v277_v36 = vadd.f32 %v769_v0, %v276_v34  ;;  %v325_v37 = vpop.f32.mrf.mxu3 }
  0xb6   :  { %414 = vst.msk [vmem:[%s854_s3 + $0x24] sm:$0xf] %vm404_vm1, %v397_v33  ;;  %v390_v38 = vpack.c.bf16 %v374_v35, %v374_v35  ;;  %v258_v39 = vpop.f32.mrf.mxu0 }
  0xb7   :  { %v326_v40 = vadd.f32 %v325_v37, %v277_v36  ;;  %v259_v41 = vadd.f32 %v769_v0, %v258_v39  ;;  %v307_v42 = vpop.f32.mrf.mxu1 }
  0xb8   :  { %407 = vst.msk [vmem:[%s854_s3 + $0x8] sm:$0xf] %vm404_vm1, %v390_v38 }
  0xb9   :  { %vm350_vm6 = vcmp.ge.f32.partialorder %v326_v40, 0.0  ;;  %v366_v43 = vmul.f32 0.2, %v326_v40  ;;  %v308_v44 = vadd.f32 %v307_v42, %v259_v41 }
  0xbb   :  { %v382_v45 = vsel %vm350_vm6, %v326_v40, %v366_v43  ;;  %vm343_vm7 = vcmp.ge.f32.partialorder %v308_v44, 0.0  ;;  %v359_v46 = vmul.f32 0.2, %v308_v44 }
  0xbc   :  { %v398_v47 = vpack.c.bf16 %v382_v45, %v382_v45  ;;  %v278_v48 = vpop.f32.mrf.mxu2 }
  0xbd   :  { %v375_v49 = vsel %vm343_vm7, %v308_v44, %v359_v46  ;;  %v279_v50 = vadd.f32 %v769_v0, %v278_v48  ;;  %v327_v51 = vpop.f32.mrf.mxu3 }
  0xbe   :  { %415 = vst.msk [vmem:[%s854_s3 + $0x28] sm:$0xf] %vm404_vm1, %v398_v47  ;;  %v391_v52 = vpack.c.bf16 %v375_v49, %v375_v49  ;;  %v261_v53 = vpop.f32.mrf.mxu0 }
  0xbf   :  { %v328_v54 = vadd.f32 %v327_v51, %v279_v50  ;;  %v262_v55 = vadd.f32 %v769_v0, %v261_v53  ;;  %v310_v56 = vpop.f32.mrf.mxu1 }
  0xc0   :  { %408 = vst.msk [vmem:[%s854_s3 + $0xc] sm:$0xf] %vm404_vm1, %v391_v52 }
  0xc1   :  { %vm351_vm8 = vcmp.ge.f32.partialorder %v328_v54, 0.0  ;;  %v367_v57 = vmul.f32 0.2, %v328_v54  ;;  %v311_v58 = vadd.f32 %v310_v56, %v262_v55 }
  0xc3   :  { %v383_v59 = vsel %vm351_vm8, %v328_v54, %v367_v57  ;;  %vm344_vm9 = vcmp.ge.f32.partialorder %v311_v58, 0.0  ;;  %v360_v60 = vmul.f32 0.2, %v311_v58 }
  0xc4   :  { %v399_v61 = vpack.c.bf16 %v383_v59, %v383_v59  ;;  %v281_v62 = vpop.f32.mrf.mxu2 }
  0xc5   :  { %v376_v63 = vsel %vm344_vm9, %v311_v58, %v360_v60  ;;  %v282_v1 = vadd.f32 %v769_v0, %v281_v62  ;;  %v330_v2 = vpop.f32.mrf.mxu3 }
  0xc6   :  { %416 = vst.msk [vmem:[%s854_s3 + $0x2c] sm:$0xf] %vm404_vm1, %v399_v61  ;;  %v392_v3 = vpack.c.bf16 %v376_v63, %v376_v63  ;;  %v263_v4 = vpop.f32.mrf.mxu0 }
  0xc7   :  { %v331_v5 = vadd.f32 %v330_v2, %v282_v1  ;;  %v264_v6 = vadd.f32 %v769_v0, %v263_v4  ;;  %v312_v7 = vpop.f32.mrf.mxu1 }
  0xc8   :  { %409 = vst.msk [vmem:[%s854_s3 + $0x10] sm:$0xf] %vm404_vm1, %v392_v3 }
  0xc9   :  { %vm352_vm10 = vcmp.ge.f32.partialorder %v331_v5, 0.0  ;;  %v368_v8 = vmul.f32 0.2, %v331_v5  ;;  %v313_v9 = vadd.f32 %v312_v7, %v264_v6 }
  0xcb   :  { %v384_v10 = vsel %vm352_vm10, %v331_v5, %v368_v8  ;;  %vm345_vm11 = vcmp.ge.f32.partialorder %v313_v9, 0.0  ;;  %v361_v11 = vmul.f32 0.2, %v313_v9 }
  0xcc   :  { %v400_v12 = vpack.c.bf16 %v384_v10, %v384_v10  ;;  %v283_v13 = vpop.f32.mrf.mxu2 }
  0xcd   :  { %v377_v14 = vsel %vm345_vm11, %v313_v9, %v361_v11  ;;  %v284_v15 = vadd.f32 %v769_v0, %v283_v13  ;;  %v332_v16 = vpop.f32.mrf.mxu3 }
  0xce   :  { %417 = vst.msk [vmem:[%s854_s3 + $0x30] sm:$0xf] %vm404_vm1, %v400_v12  ;;  %v393_v17 = vpack.c.bf16 %v377_v14, %v377_v14  ;;  %v266_v18 = vpop.f32.mrf.mxu0 }
  0xcf   :  { %v333_v19 = vadd.f32 %v332_v16, %v284_v15  ;;  %v267_v20 = vadd.f32 %v769_v0, %v266_v18  ;;  %v315_v21 = vpop.f32.mrf.mxu1 }
  0xd0   :  { %410 = vst.msk [vmem:[%s854_s3 + $0x14] sm:$0xf] %vm404_vm1, %v393_v17 }
  0xd1   :  { %vm353_vm12 = vcmp.ge.f32.partialorder %v333_v19, 0.0  ;;  %v369_v22 = vmul.f32 0.2, %v333_v19  ;;  %v316_v23 = vadd.f32 %v315_v21, %v267_v20 }
  0xd3   :  { %v385_v24 = vsel %vm353_vm12, %v333_v19, %v369_v22  ;;  %vm346_vm13 = vcmp.ge.f32.partialorder %v316_v23, 0.0  ;;  %v362_v25 = vmul.f32 0.2, %v316_v23 }
  0xd4   :  { %v401_v26 = vpack.c.bf16 %v385_v24, %v385_v24  ;;  %v286_v27 = vpop.f32.mrf.mxu2 }
  0xd5   :  { %v378_v28 = vsel %vm346_vm13, %v316_v23, %v362_v25  ;;  %v287_v29 = vadd.f32 %v769_v0, %v286_v27  ;;  %v335_v30 = vpop.f32.mrf.mxu3 }
  0xd6   :  { %418 = vst.msk [vmem:[%s854_s3 + $0x34] sm:$0xf] %vm404_vm1, %v401_v26  ;;  %v394_v31 = vpack.c.bf16 %v378_v28, %v378_v28  ;;  %v268_v32 = vpop.f32.mrf.mxu0 }
  0xd7   :  { %v336_v33 = vadd.f32 %v335_v30, %v287_v29  ;;  %v269_v34 = vadd.f32 %v769_v0, %v268_v32  ;;  %v317_v35 = vpop.f32.mrf.mxu1 }
  0xd8   :  { %411 = vst.msk [vmem:[%s854_s3 + $0x18] sm:$0xf] %vm404_vm1, %v394_v31 }
  0xd9   :  { %vm354_vm14 = vcmp.ge.f32.partialorder %v336_v33, 0.0  ;;  %v370_v36 = vmul.f32 0.2, %v336_v33  ;;  %v318_v37 = vadd.f32 %v317_v35, %v269_v34 }
  0xdb   :  { %v386_v38 = vsel %vm354_vm14, %v336_v33, %v370_v36  ;;  %vm347_vm15 = vcmp.ge.f32.partialorder %v318_v37, 0.0  ;;  %v363_v39 = vmul.f32 0.2, %v318_v37 }
  0xdc   :  { %v402_v40 = vpack.c.bf16 %v386_v38, %v386_v38  ;;  %v288_v41 = vpop.f32.mrf.mxu2 }
  0xdd   :  { %v379_v42 = vsel %vm347_vm15, %v318_v37, %v363_v39  ;;  %v289_v43 = vadd.f32 %v769_v0, %v288_v41  ;;  %v337_v45 = vpop.f32.mrf.mxu3 }
  0xde   :  { %419 = vst.msk [vmem:[%s854_s3 + $0x38] sm:$0xf] %vm404_vm1, %v402_v40  ;;  %v395_v44 = vpack.c.bf16 %v379_v42, %v379_v42 }
  0xdf   :  { %v338_v46 = vadd.f32 %v337_v45, %v289_v43 }
  0xe0   :  { %412 = vst.msk [vmem:[%s854_s3 + $0x1c] sm:$0xf] %vm404_vm1, %v395_v44 }
  0xe1   :  { %vm355_vm0 = vcmp.ge.f32.partialorder %v338_v46, 0.0  ;;  %v371_v47 = vmul.f32 0.2, %v338_v46 }
  0xe3   :  { %v387_v48 = vsel %vm355_vm0, %v338_v46, %v371_v47 }
  0xe4   :  { %v403_v49 = vpack.c.bf16 %v387_v48, %v387_v48 }
  0xe6   :  { %420 = vst.msk [vmem:[%s854_s3 + $0x3c] sm:$0xf] %vm404_vm1, %v403_v49 }

// kernel: discriminator_forward.8
= control target key start
LH: loop header
LB: loop body
LE: loop exit
PB: predicated region body
PF: predicated region fallthrough
CT: control target
= control target key end

     0   :  { %vm414_vm1 = vcmask 519168   ;;  %s807_s1 = inlined_call_operand.vmem [shape: bf16[512,64], index: 1, kind: input, shape index: {}]   ;;  %s808_s2 = inlined_call_operand.vmem [shape: f32[1,64], index: 2, kind: input, shape index: {}]   ;;  %s809_s0 = inlined_call_operand.vmem [shape: bf16[32,512], index: 0, kind: input, shape index: {}]   ;;  %s810_s3 = inlined_call_operand.vmem [shape: bf16[32,64], index: 3, kind: output, shape index: {}]  }
   0x1   :  { %v598_v0 = vld [vmem:[%s807_s1 + $0x38] sm:$0xff]  ;;  %v597_v4 = vld [vmem:[%s807_s1 + $0x30] sm:$0xff]  ;;  %v596_v8 = vld [vmem:[%s807_s1 + $0x28] sm:$0xff] }
   0x2   :  { %v606_v1 = vld [vmem:[%s807_s1 + $0x78] sm:$0xff]  ;;  %322 = vmatpush.bf16.msra.mxu0 %v598_v0  ;;  %v605_v5 = vld [vmem:[%s807_s1 + $0x70] sm:$0xff]  ;;  %v604_v9 = vld [vmem:[%s807_s1 + $0x68] sm:$0xff] }
   0x3   :  { %v614_v2 = vld [vmem:[%s807_s1 + $0xb8] sm:$0xff]  ;;  %341 = vmatpush.bf16.msra.mxu1 %v606_v1  ;;  %v613_v6 = vld [vmem:[%s807_s1 + $0xb0] sm:$0xff]  ;;  %v612_v10 = vld [vmem:[%s807_s1 + $0xa8] sm:$0xff] }
   0x4   :  { %v622_v3 = vld [vmem:[%s807_s1 + $0xf8] sm:$0xff]  ;;  %360 = vmatpush.bf16.msra.mxu2 %v614_v2  ;;  %v621_v7 = vld [vmem:[%s807_s1 + $0xf0] sm:$0xff]  ;;  %v620_v11 = vld [vmem:[%s807_s1 + $0xe8] sm:$0xff] }
   0x5   :  { %379 = vmatpush.bf16.msra.mxu3 %v622_v3  ;;  %v595_v12 = vld [vmem:[%s807_s1 + $0x20] sm:$0xff]  ;;  %v594_v16 = vld [vmem:[%s807_s1 + $0x18] sm:$0xff]  ;;  %v593_v20 = vld [vmem:[%s807_s1 + $0x10] sm:$0xff] }
   0x6   :  { %323 = vmatpush.bf16.msra.mxu0 %v597_v4  ;;  %v603_v13 = vld [vmem:[%s807_s1 + $0x60] sm:$0xff]  ;;  %v602_v17 = vld [vmem:[%s807_s1 + $0x58] sm:$0xff]  ;;  %v601_v21 = vld [vmem:[%s807_s1 + $0x50] sm:$0xff] }
   0x7   :  { %342 = vmatpush.bf16.msra.mxu1 %v605_v5  ;;  %v611_v14 = vld [vmem:[%s807_s1 + $0xa0] sm:$0xff]  ;;  %v610_v18 = vld [vmem:[%s807_s1 + $0x98] sm:$0xff]  ;;  %v609_v22 = vld [vmem:[%s807_s1 + $0x90] sm:$0xff] }
   0x8   :  { %361 = vmatpush.bf16.msra.mxu2 %v613_v6  ;;  %v619_v15 = vld [vmem:[%s807_s1 + $0xe0] sm:$0xff]  ;;  %v618_v19 = vld [vmem:[%s807_s1 + $0xd8] sm:$0xff]  ;;  %v617_v23 = vld [vmem:[%s807_s1 + $0xd0] sm:$0xff] }
   0x9   :  { %380 = vmatpush.bf16.msra.mxu3 %v621_v7  ;;  %v592_v24 = vld [vmem:[%s807_s1 + $0x8] sm:$0xff]  ;;  %v591_v28 = vld [vmem:[%s807_s1] sm:$0xff]  ;;  %v585_v33 = vld [vmem:[%s809_s0 + $0xc] sm:$0xf0] }
   0xa   :  { %324 = vmatpush.bf16.msra.mxu0 %v596_v8  ;;  %v600_v25 = vld [vmem:[%s807_s1 + $0x48] sm:$0xff]  ;;  %v599_v29 = vld [vmem:[%s807_s1 + $0x40] sm:$0xff]  ;;  %v427_v35 = vld [vmem:[%s809_s0 + $0x10] sm:$0xf0] }
   0xb   :  { %343 = vmatpush.bf16.msra.mxu1 %v604_v9  ;;  %v608_v26 = vld [vmem:[%s807_s1 + $0x88] sm:$0xff]  ;;  %v607_v30 = vld [vmem:[%s807_s1 + $0x80] sm:$0xff]  ;;  %v586_v37 = vld [vmem:[%s809_s0 + $0x14] sm:$0xf0] }
   0xc   :  { %362 = vmatpush.bf16.msra.mxu2 %v612_v10  ;;  %v616_v27 = vld [vmem:[%s807_s1 + $0xc8] sm:$0xff]  ;;  %v615_v31 = vld [vmem:[%s807_s1 + $0xc0] sm:$0xff]  ;;  %v435_v39 = vld [vmem:[%s809_s0 + $0x18] sm:$0xf0] }
   0xd   :  { %381 = vmatpush.bf16.msra.mxu3 %v620_v11  ;;  %v425_v32 = vld [vmem:[%s809_s0] sm:$0xf]  ;;  %v583_v34 = vld [vmem:[%s809_s0 + $0x4] sm:$0xf]  ;;  %v433_v36 = vld [vmem:[%s809_s0 + $0x8] sm:$0xf] }
   0xe   :  { %325 = vmatpush.bf16.msra.mxu0 %v595_v12  ;;  %v584_v38 = vld [vmem:[%s809_s0 + $0xc] sm:$0xf]  ;;  %v426_v40 = vor.u32 %v585_v33, %v425_v32  ;;  %v430_v41 = vor.u32 %v583_v34, %v427_v35  ;;  %v434_v42 = vor.u32 %v586_v37, %v433_v36  ;;  %v441_v44 = vld [vmem:[%s809_s0 + $0x20] sm:$0xf]  ;;  %v589_v45 = vld [vmem:[%s809_s0 + $0x2c] sm:$0xf0] }
   0xf   :  { %344 = vmatpush.bf16.msra.mxu1 %v603_v13  ;;  %v438_v43 = vor.u32 %v584_v38, %v435_v39  ;;  %v587_v46 = vld [vmem:[%s809_s0 + $0x24] sm:$0xf]  ;;  %v443_v47 = vld [vmem:[%s809_s0 + $0x30] sm:$0xf0]  ;;  %v449_v48 = vld [vmem:[%s809_s0 + $0x28] sm:$0xf]  ;;  %v442_v52 = vor.u32 %v589_v45, %v441_v44 }
  0x10   :  { %363 = vmatpush.bf16.msra.mxu2 %v611_v14  ;;  %v590_v49 = vld [vmem:[%s809_s0 + $0x34] sm:$0xf0]  ;;  %v588_v50 = vld [vmem:[%s809_s0 + $0x2c] sm:$0xf]  ;;  %v451_v51 = vld [vmem:[%s809_s0 + $0x38] sm:$0xf0]  ;;  %v446_v53 = vor.u32 %v587_v46, %v443_v47 }
  0x11   :  { %382 = vmatpush.bf16.msra.mxu3 %v619_v15  ;;  %v450_v54 = vor.u32 %v590_v49, %v449_v48  ;;  %v454_v55 = vor.u32 %v588_v50, %v451_v51  ;;  %v623_v56 = vld [vmem:[%s808_s2] ss:$0 sm:$0xff] }
  0x12   :  { %326 = vmatpush.bf16.msra.mxu0 %v594_v16 }
  0x13   :  { %345 = vmatpush.bf16.msra.mxu1 %v602_v17 }
  0x14   :  { %364 = vmatpush.bf16.msra.mxu2 %v610_v18 }
  0x15   :  { %383 = vmatpush.bf16.msra.mxu3 %v618_v19 }
  0x16   :  { %327 = vmatpush.bf16.msra.mxu0 %v593_v20 }
  0x17   :  { %346 = vmatpush.bf16.msra.mxu1 %v601_v21 }
  0x18   :  { %365 = vmatpush.bf16.msra.mxu2 %v609_v22 }
  0x19   :  { %384 = vmatpush.bf16.msra.mxu3 %v617_v23 }
  0x1a   :  { %328 = vmatpush.bf16.msra.mxu0 %v592_v24 }
  0x1b   :  { %347 = vmatpush.bf16.msra.mxu1 %v600_v25 }
  0x1c   :  { %366 = vmatpush.bf16.msra.mxu2 %v608_v26 }
  0x1d   :  { %385 = vmatpush.bf16.msra.mxu3 %v616_v27 }
  0x1e   :  { %329 = vmatpush.bf16.msra.mxu0 %v591_v28 }
  0x1f   :  { %348 = vmatpush.bf16.msra.mxu1 %v599_v29 }
  0x20   :  { %367 = vmatpush.bf16.msra.mxu2 %v607_v30 }
  0x21   :  { %386 = vmatpush.bf16.msra.mxu3 %v615_v31  ;;  %330 = vmatmul.bf16.vlgmr.msra.gmra.mxu0 %v426_v40 }
  0x22   :  { %349 = vmatmul.bf16.vlgmr.msra.gmra.mxu1 %v430_v41 }
  0x23   :  { %368 = vmatmul.bf16.vlgmr.msra.gmra.mxu2 %v434_v42 }
  0x24   :  { %387 = vmatmul.bf16.vlgmr.msra.gmra.mxu3 %v438_v43 }
  0x31   :  { %335 = vmatmul.bf16.gmra.mxu0 %v442_v52 }
  0x32   :  { %354 = vmatmul.bf16.gmra.mxu1 %v446_v53 }
  0x33   :  { %373 = vmatmul.bf16.gmra.mxu2 %v450_v54 }
  0x34   :  { %392 = vmatmul.bf16.gmra.mxu3 %v454_v55 }
  0x9e   :  { %v331_v57 = vpop.f32.mrf.mxu0 }
  0x9f   :  { %v350_v58 = vpop.f32.mrf.mxu1  ;;  %v332_v59 = vadd.f32 %v623_v56, %v331_v57 }
  0xa1   :  { %v351_v60 = vadd.f32 %v350_v58, %v332_v59 }
  0xa6   :  { %v369_v61 = vpop.f32.mrf.mxu2  ;;  %v333_v0 = vpop.f32.mrf.mxu0 }
  0xa7   :  { %v388_v62 = vpop.f32.mrf.mxu3  ;;  %v370_v63 = vadd.f32 %v369_v61, %v351_v60  ;;  %v352_v1 = vpop.f32.mrf.mxu1  ;;  %v334_v3 = vadd.f32 %v623_v56, %v333_v0 }
  0xa9   :  { %v389_v2 = vadd.f32 %v388_v62, %v370_v63  ;;  %v353_v6 = vadd.f32 %v352_v1, %v334_v3 }
  0xab   :  { %vm398_vm0 = vcmp.ge.f32.partialorder %v389_v2, 0.0  ;;  %v402_v4 = vmul.f32 0.2, %v389_v2 }
  0xad   :  { %v406_v5 = vsel %vm398_vm0, %v389_v2, %v402_v4 }
  0xae   :  { %v410_v7 = vpack.c.bf16 %v406_v5, %v406_v5  ;;  %v371_v8 = vpop.f32.mrf.mxu2  ;;  %v336_v11 = vpop.f32.mrf.mxu0 }
  0xaf   :  { %v390_v9 = vpop.f32.mrf.mxu3  ;;  %v372_v10 = vadd.f32 %v371_v8, %v353_v6  ;;  %v337_v12 = vadd.f32 %v623_v56, %v336_v11  ;;  %v355_v14 = vpop.f32.mrf.mxu1 }
  0xb0   :  { %415 = vst.msk [vmem:[%s810_s3] sm:$0xf] %vm414_vm1, %v410_v7 }
  0xb1   :  { %v391_v13 = vadd.f32 %v390_v9, %v372_v10  ;;  %v356_v16 = vadd.f32 %v355_v14, %v337_v12 }
  0xb3   :  { %vm399_vm2 = vcmp.ge.f32.partialorder %v391_v13, 0.0  ;;  %v403_v15 = vmul.f32 0.2, %v391_v13 }
  0xb5   :  { %v407_v17 = vsel %vm399_vm2, %v391_v13, %v403_v15 }
  0xb6   :  { %v411_v18 = vpack.c.bf16 %v407_v17, %v407_v17  ;;  %v374_v19 = vpop.f32.mrf.mxu2  ;;  %v338_v22 = vpop.f32.mrf.mxu0 }
  0xb7   :  { %v393_v20 = vpop.f32.mrf.mxu3  ;;  %v375_v21 = vadd.f32 %v374_v19, %v356_v16  ;;  %v339_v24 = vadd.f32 %v623_v56, %v338_v22  ;;  %v357_v26 = vpop.f32.mrf.mxu1 }
  0xb8   :  { %416 = vst.msk [vmem:[%s810_s3 + $0x4] sm:$0xf] %vm414_vm1, %v411_v18 }
  0xb9   :  { %v394_v23 = vadd.f32 %v393_v20, %v375_v21  ;;  %v358_v28 = vadd.f32 %v357_v26, %v339_v24 }
  0xbb   :  { %vm400_vm3 = vcmp.ge.f32.partialorder %v394_v23, 0.0  ;;  %v404_v25 = vmul.f32 0.2, %v394_v23 }
  0xbd   :  { %v408_v27 = vsel %vm400_vm3, %v394_v23, %v404_v25 }
  0xbe   :  { %v412_v29 = vpack.c.bf16 %v408_v27, %v408_v27  ;;  %v376_v30 = vpop.f32.mrf.mxu2 }
  0xbf   :  { %v377_v31 = vadd.f32 %v376_v30, %v358_v28  ;;  %v395_v32 = vpop.f32.mrf.mxu3 }
  0xc0   :  { %417 = vst.msk [vmem:[%s810_s3 + $0x8] sm:$0xf] %vm414_vm1, %v412_v29 }
  0xc1   :  { %v396_v33 = vadd.f32 %v395_v32, %v377_v31 }
  0xc3   :  { %vm401_vm4 = vcmp.ge.f32.partialorder %v396_v33, 0.0  ;;  %v405_v34 = vmul.f32 0.2, %v396_v33 }
  0xc5   :  { %v409_v35 = vsel %vm401_vm4, %v396_v33, %v405_v34 }
  0xc6   :  { %v413_v36 = vpack.c.bf16 %v409_v35, %v409_v35 }
  0xc8   :  { %418 = vst.msk [vmem:[%s810_s3 + $0xc] sm:$0xf] %vm414_vm1, %v413_v36 }

// kernel: discriminator_forward.9
= control target key start
LH: loop header
LB: loop body
LE: loop exit
PB: predicated region body
PF: predicated region fallthrough
CT: control target
= control target key end

     0   :  { %s2001_s0 = inlined_call_operand.vmem [shape: bf16[18,1024], index: 0, kind: input, shape index: {}]   ;;  %s2002_s1 = inlined_call_operand.vmem [shape: bf16[1024,128], index: 1, kind: input, shape index: {}]   ;;  %s2003_s2 = inlined_call_operand.vmem [shape: f32[1,128], index: 2, kind: input, shape index: {}]   ;;  %s2004_s3 = inlined_call_operand.vmem [shape: f32[1,128], index: 3, kind: input, shape index: {}]   ;;  %s2005_s4 = inlined_call_operand.vmem [shape: f32[1,128], index: 4, kind: input, shape index: {}]   ;;  %s2006_s5 = inlined_call_operand.vmem [shape: bf16[128,128], index: 5, kind: input, shape index: {}]   ;;  %s2007_s6 = inlined_call_operand.vmem [shape: f32[1,128], index: 6, kind: input, shape index: {}]   ;;  %s2008_s7 = inlined_call_operand.vmem [shape: f32[4,18,128], index: 7, kind: input, shape index: {}]   ;;  %s2009_s8 = inlined_call_operand.vmem [shape: f32[2,18], index: 8, kind: input, shape index: {}]   ;;  %s2010_s9 = inlined_call_operand.hbm [shape: f32[2,2], index: 9, kind: output, shape index: {0}]   ;;  %s2011_s10 = inlined_call_operand.vmem [shape: f32[18,1], index: 10, kind: output, shape index: {1}]   ;;  %s2012_s11 = inlined_call_operand.vmem [shape: f32[2,4], index: 11, kind: output, shape index: {2}]  }
   0x1   :  { %v1466_v0 = vld [vmem:[%s2002_s1 + $0x38] sm:$0xff]  ;;  %v1465_v4 = vld [vmem:[%s2002_s1 + $0x30] sm:$0xff]  ;;  %v1464_v8 = vld [vmem:[%s2002_s1 + $0x28] sm:$0xff] }
   0x2   :  { %v1474_v1 = vld [vmem:[%s2002_s1 + $0x78] sm:$0xff]  ;;  %632 = vmatpush.bf16.msra.mxu0 %v1466_v0  ;;  %v1473_v5 = vld [vmem:[%s2002_s1 + $0x70] sm:$0xff]  ;;  %v1472_v9 = vld [vmem:[%s2002_s1 + $0x68] sm:$0xff] }
   0x3   :  { %v1482_v2 = vld [vmem:[%s2002_s1 + $0xb8] sm:$0xff]  ;;  %650 = vmatpush.bf16.msra.mxu1 %v1474_v1  ;;  %v1481_v6 = vld [vmem:[%s2002_s1 + $0xb0] sm:$0xff]  ;;  %v1480_v10 = vld [vmem:[%s2002_s1 + $0xa8] sm:$0xff] }
   0x4   :  { %v1490_v3 = vld [vmem:[%s2002_s1 + $0xf8] sm:$0xff]  ;;  %668 = vmatpush.bf16.msra.mxu2 %v1482_v2  ;;  %v1489_v7 = vld [vmem:[%s2002_s1 + $0xf0] sm:$0xff]  ;;  %v1488_v11 = vld [vmem:[%s2002_s1 + $0xe8] sm:$0xff] }
   0x5   :  { %686 = vmatpush.bf16.msra.mxu3 %v1490_v3  ;;  %v1463_v12 = vld [vmem:[%s2002_s1 + $0x20] sm:$0xff]  ;;  %v1462_v16 = vld [vmem:[%s2002_s1 + $0x18] sm:$0xff]  ;;  %v1461_v20 = vld [vmem:[%s2002_s1 + $0x10] sm:$0xff] }
   0x6   :  { %633 = vmatpush.bf16.msra.mxu0 %v1465_v4  ;;  %v1471_v13 = vld [vmem:[%s2002_s1 + $0x60] sm:$0xff]  ;;  %v1470_v17 = vld [vmem:[%s2002_s1 + $0x58] sm:$0xff]  ;;  %v1469_v21 = vld [vmem:[%s2002_s1 + $0x50] sm:$0xff] }
   0x7   :  { %651 = vmatpush.bf16.msra.mxu1 %v1473_v5  ;;  %v1479_v14 = vld [vmem:[%s2002_s1 + $0xa0] sm:$0xff]  ;;  %v1478_v18 = vld [vmem:[%s2002_s1 + $0x98] sm:$0xff]  ;;  %v1477_v22 = vld [vmem:[%s2002_s1 + $0x90] sm:$0xff] }
   0x8   :  { %669 = vmatpush.bf16.msra.mxu2 %v1481_v6  ;;  %v1487_v15 = vld [vmem:[%s2002_s1 + $0xe0] sm:$0xff]  ;;  %v1486_v19 = vld [vmem:[%s2002_s1 + $0xd8] sm:$0xff]  ;;  %v1485_v23 = vld [vmem:[%s2002_s1 + $0xd0] sm:$0xff] }
   0x9   :  { %687 = vmatpush.bf16.msra.mxu3 %v1489_v7  ;;  %v1460_v24 = vld [vmem:[%s2002_s1 + $0x8] sm:$0xff] }
   0xa   :  { %634 = vmatpush.bf16.msra.mxu0 %v1464_v8  ;;  %v1468_v25 = vld [vmem:[%s2002_s1 + $0x48] sm:$0xff] }
   0xb   :  { %652 = vmatpush.bf16.msra.mxu1 %v1472_v9  ;;  %v1476_v26 = vld [vmem:[%s2002_s1 + $0x88] sm:$0xff] }
   0xc   :  { %670 = vmatpush.bf16.msra.mxu2 %v1480_v10  ;;  %v1484_v27 = vld [vmem:[%s2002_s1 + $0xc8] sm:$0xff] }
   0xd   :  { %688 = vmatpush.bf16.msra.mxu3 %v1488_v11 }
   0xe   :  { %635 = vmatpush.bf16.msra.mxu0 %v1463_v12 }
   0xf   :  { %653 = vmatpush.bf16.msra.mxu1 %v1471_v13 }
  0x10   :  { %671 = vmatpush.bf16.msra.mxu2 %v1479_v14 }
  0x11   :  { %689 = vmatpush.bf16.msra.mxu3 %v1487_v15 }
  0x12   :  { %636 = vmatpush.bf16.msra.mxu0 %v1462_v16 }
  0x13   :  { %654 = vmatpush.bf16.msra.mxu1 %v1470_v17 }
  0x14   :  { %672 = vmatpush.bf16.msra.mxu2 %v1478_v18 }
  0x15   :  { %690 = vmatpush.bf16.msra.mxu3 %v1486_v19 }
  0x16   :  { %637 = vmatpush.bf16.msra.mxu0 %v1461_v20 }
  0x17   :  { %655 = vmatpush.bf16.msra.mxu1 %v1469_v21 }
  0x18   :  { %673 = vmatpush.bf16.msra.mxu2 %v1477_v22 }
  0x19   :  { %691 = vmatpush.bf16.msra.mxu3 %v1485_v23 }
  0x1a   :  { %17 = vsyncpa [#allocation3], 0  ;;  %v1459_v28 = vld [vmem:[%s2002_s1] sm:$0xff]  ;;  %638 = vmatpush.bf16.msra.mxu0 %v1460_v24  ;;  %v1128_v36 = vld [vmem:[%s2001_s0 + $0x8] sm:$0xf]  ;;  %vm790_vm1 = vcmask 1041408  }
  0x1b   :  { %v1467_v29 = vld [vmem:[%s2002_s1 + $0x40] sm:$0xff]  ;;  %656 = vmatpush.bf16.msra.mxu1 %v1468_v25  ;;  %v1456_v37 = vld [vmem:[%s2001_s0 + $0x24] sm:$0xf0]  ;;  %v1452_v38 = vld [vmem:[%s2001_s0 + $0xc] sm:$0xf]  ;;  %vm786_vm7 = vcmask 146432  }
  0x1c   :  { %v1475_v30 = vld [vmem:[%s2002_s1 + $0x80] sm:$0xff]  ;;  %674 = vmatpush.bf16.msra.mxu2 %v1476_v26  ;;  %v1130_v39 = vld [vmem:[%s2001_s0 + $0x28] sm:$0xf0]  ;;  %v1498_v40 = vld [vmem:[%s2002_s1 + $0x138] sm:$0xff]  ;;  %v1129_v44 = vor.u32 %v1456_v37, %v1128_v36  ;;  %vm873_vm8 = vcmask 1040384   ;;  %vm891_vm12 = vcmask 7168  }
  0x1d   :  { %v1483_v31 = vld [vmem:[%s2002_s1 + $0xc0] sm:$0xff]  ;;  %692 = vmatpush.bf16.msra.mxu3 %v1484_v27  ;;  %v1506_v41 = vld [vmem:[%s2002_s1 + $0x178] sm:$0xff]  ;;  %v1133_v45 = vor.u32 %v1452_v38, %v1130_v39  ;;  %v1497_v48 = vld [vmem:[%s2002_s1 + $0x130] sm:$0xff]  ;;  %vm1065_vm13 = vcmask 23552   ;;  %vm1061_vm14 = vcmask 15360   ;;  %vm1001_vm15 = vcmask 1024  }
  0x1e   :  { %v1120_v32 = vld [vmem:[%s2001_s0] sm:$0xf]  ;;  %v1451_v34 = vld [vmem:[%s2001_s0 + $0x4] sm:$0xf]  ;;  %639 = vmatpush.bf16.msra.mxu0 %v1459_v28  ;;  %v1514_v46 = vld [vmem:[%s2002_s1 + $0x1b8] sm:$0xff]  ;;  %s1101_s16 = sshll.u32 %s2010_s9, 4  ;;  %s1102_s16 = int_to_ptr.hbm [resolvable:$true] %s1101_s16 }
  0x1f   :  { %v1455_v33 = vld [vmem:[%s2001_s0 + $0x1c] sm:$0xf0]  ;;  %v1122_v35 = vld [vmem:[%s2001_s0 + $0x20] sm:$0xf0]  ;;  %657 = vmatpush.bf16.msra.mxu1 %v1467_v29  ;;  %v1522_v47 = vld [vmem:[%s2002_s1 + $0x1f8] sm:$0xff] }
  0x20   :  { %v1121_v42 = vor.u32 %v1455_v33, %v1120_v32  ;;  %v1125_v43 = vor.u32 %v1451_v34, %v1122_v35  ;;  %675 = vmatpush.bf16.msra.mxu2 %v1475_v30  ;;  %v1505_v49 = vld [vmem:[%s2002_s1 + $0x170] sm:$0xff]  ;;  %v1496_v52 = vld [vmem:[%s2002_s1 + $0x128] sm:$0xff]  ;;  %v44_v54 = vld [vmem:[%s2001_s0 + $0x40] sm:$0x11] }
  0x21   :  { %693 = vmatpush.bf16.msra.mxu3 %v1483_v31  ;;  %v1513_v50 = vld [vmem:[%s2002_s1 + $0x1b0] sm:$0xff]  ;;  %v1504_v53 = vld [vmem:[%s2002_s1 + $0x168] sm:$0xff]  ;;  %v1495_v58 = vld [vmem:[%s2002_s1 + $0x120] sm:$0xff]  ;;  %v208_v60 = vunpack.c.l.b16 %v44_v54  ;;  %v209_v61 = vunpack.c.h.b16 %v44_v54 }
  0x22   :  { %704 = vmatpush.bf16.msrb.mxu0 %v1498_v40  ;;  %658 = vmatmul.bf16.vlgmr.msra.gmra.mxu1 %v1125_v43  ;;  %v1521_v51 = vld [vmem:[%s2002_s1 + $0x1f0] sm:$0xff]  ;;  %v1512_v55 = vld [vmem:[%s2002_s1 + $0x1a8] sm:$0xff]  ;;  %v1503_v59 = vld [vmem:[%s2002_s1 + $0x160] sm:$0xff] }
  0x23   :  { %722 = vmatpush.bf16.msrb.mxu1 %v1506_v41  ;;  %640 = vmatmul.bf16.vlgmr.msra.gmra.mxu0 %v1121_v42  ;;  %v1520_v56 = vld [vmem:[%s2002_s1 + $0x1e8] sm:$0xff]  ;;  %v1511_v0 = vld [vmem:[%s2002_s1 + $0x1a0] sm:$0xff]  ;;  %v1494_v2 = vld [vmem:[%s2002_s1 + $0x118] sm:$0xff]  ;;  %v224_v4 = vpack.c.b16 %v208_v60, %v208_v60  ;;  %v225_v5 = vpack.c.b16 %v209_v61, %v209_v61 }
  0x24   :  { %676 = vmatmul.bf16.vlgmr.msra.gmra.mxu2 %v1129_v44  ;;  %694 = vmatmul.bf16.vlgmr.msra.gmra.mxu3 %v1133_v45  ;;  %v45_v57 = vld [vmem:[%s2001_s0 + $0x48] sm:$0x11]  ;;  %v1519_v1 = vld [vmem:[%s2002_s1 + $0x1e0] sm:$0xff]  ;;  %v1502_v3 = vld [vmem:[%s2002_s1 + $0x158] sm:$0xff] }
  0x25   :  { %740 = vmatpush.bf16.msrb.mxu2 %v1514_v46  ;;  %758 = vmatpush.bf16.msrb.mxu3 %v1522_v47  ;;  %v210_v62 = vunpack.c.l.b16 %v45_v57  ;;  %v211_v63 = vunpack.c.h.b16 %v45_v57  ;;  %v1510_v8 = vld [vmem:[%s2002_s1 + $0x198] sm:$0xff]  ;;  %v1493_v10 = vld [vmem:[%s2002_s1 + $0x110] sm:$0xff]  ;;  %v1492_v14 = vld [vmem:[%s2002_s1 + $0x108] sm:$0xff] }
  0x26   :  { %705 = vmatpush.bf16.msrb.mxu0 %v1497_v48  ;;  %v1518_v9 = vld [vmem:[%s2002_s1 + $0x1d8] sm:$0xff]  ;;  %v1501_v11 = vld [vmem:[%s2002_s1 + $0x150] sm:$0xff]  ;;  %v1500_v15 = vld [vmem:[%s2002_s1 + $0x148] sm:$0xff] }
  0x27   :  { %723 = vmatpush.bf16.msrb.mxu1 %v1505_v49  ;;  %v226_v6 = vpack.c.b16 %v210_v62, %v210_v62  ;;  %v227_v7 = vpack.c.b16 %v211_v63, %v211_v63  ;;  %v1509_v12 = vld [vmem:[%s2002_s1 + $0x190] sm:$0xff]  ;;  %v1508_v16 = vld [vmem:[%s2002_s1 + $0x188] sm:$0xff]  ;;  %v1491_v18 = vld [vmem:[%s2002_s1 + $0x100] sm:$0xff] }
  0x28   :  { %v1517_v13 = vld [vmem:[%s2002_s1 + $0x1d0] sm:$0xff]  ;;  %v1516_v17 = vld [vmem:[%s2002_s1 + $0x1c8] sm:$0xff]  ;;  %v1499_v19 = vld [vmem:[%s2002_s1 + $0x140] sm:$0xff] }
  0x29   :  { %741 = vmatpush.bf16.msrb.mxu2 %v1513_v50  ;;  %759 = vmatpush.bf16.msrb.mxu3 %v1521_v51  ;;  %v1507_v20 = vld [vmem:[%s2002_s1 + $0x180] sm:$0xff]  ;;  %v1136_v22 = vld [vmem:[%s2001_s0 + $0x10] sm:$0xf]  ;;  %v1453_v24 = vld [vmem:[%s2001_s0 + $0x14] sm:$0xf] }
  0x2a   :  { %706 = vmatpush.bf16.msrb.mxu0 %v1496_v52  ;;  %v1515_v21 = vld [vmem:[%s2002_s1 + $0x1c0] sm:$0xff]  ;;  %v1457_v23 = vld [vmem:[%s2001_s0 + $0x2c] sm:$0xf0]  ;;  %v1138_v25 = vld [vmem:[%s2001_s0 + $0x30] sm:$0xf0] }
  0x2b   :  { %724 = vmatpush.bf16.msrb.mxu1 %v1504_v53  ;;  %v1144_v26 = vld [vmem:[%s2001_s0 + $0x18] sm:$0xf]  ;;  %v1454_v28 = vld [vmem:[%s2001_s0 + $0x1c] sm:$0xf]  ;;  %v1137_v30 = vor.u32 %v1457_v23, %v1136_v22  ;;  %v1141_v31 = vor.u32 %v1453_v24, %v1138_v25  ;;  %v46_v34 = vld [vmem:[%s2001_s0 + $0x50] sm:$0x11]  ;;  %v815_v23 = vlaneseq }
  0x2c   :  { %v1458_v27 = vld [vmem:[%s2001_s0 + $0x34] sm:$0xf0]  ;;  %v1146_v29 = vld [vmem:[%s2001_s0 + $0x38] sm:$0xf0]  ;;  %v212_v36 = vunpack.c.l.b16 %v46_v34  ;;  %v213_v37 = vunpack.c.h.b16 %v46_v34  ;;  %v1529_v45 = vld [vmem:[%s2006_s5 + $0x30] sm:$0xff] }
  0x2d   :  { %742 = vmatpush.bf16.msrb.mxu2 %v1512_v55  ;;  %760 = vmatpush.bf16.msrb.mxu3 %v1520_v56  ;;  %v1145_v32 = vor.u32 %v1458_v27, %v1144_v26  ;;  %v1149_v33 = vor.u32 %v1454_v28, %v1146_v29  ;;  %v47_v35 = vld [vmem:[%s2001_s0 + $0x58] sm:$0x11]  ;;  %v1528_v48 = vld [vmem:[%s2006_s5 + $0x28] sm:$0xff]  ;;  %v1527_v49 = vld [vmem:[%s2006_s5 + $0x20] sm:$0xff]  ;;  %v816_v27 = vshrl.u32 %v815_v23, 7 }
  0x2e   :  { %707 = vmatpush.bf16.msrb.mxu0 %v1495_v58  ;;  %v214_v38 = vunpack.c.l.b16 %v47_v35  ;;  %v215_v39 = vunpack.c.h.b16 %v47_v35  ;;  %v228_v40 = vpack.c.b16 %v212_v36, %v212_v36  ;;  %v229_v41 = vpack.c.b16 %v213_v37, %v213_v37  ;;  %v1530_v44 = vld [vmem:[%s2006_s5 + $0x38] sm:$0xff]  ;;  %v1525_v55 = vld [vmem:[%s2006_s5 + $0x10] sm:$0xff]  ;;  %v1524_v60 = vld [vmem:[%s2006_s5 + $0x8] sm:$0xff] }
  0x2f   :  { %725 = vmatpush.bf16.msrb.mxu1 %v1503_v59  ;;  %v1526_v54 = vld [vmem:[%s2006_s5 + $0x18] sm:$0xff]  ;;  %v1541_v61 = vld [vmem:[%s2003_s2] ss:$0 sm:$0xff]  ;;  %v817_v34 = vadd.s32 8, %v816_v27 }
  0x30   :  { %v230_v42 = vpack.c.b16 %v214_v38, %v214_v38  ;;  %v231_v43 = vpack.c.b16 %v215_v39, %v215_v39  ;;  %v1523_v62 = vld [vmem:[%s2006_s5] sm:$0xff] }
  0x31   :  { %743 = vmatpush.bf16.msrb.mxu2 %v1511_v0  ;;  %761 = vmatpush.bf16.msrb.mxu3 %v1519_v1  ;;  %vm823_vm3 = vcmp.lt.s32.totalorder %v817_v34, 9  ;;  %vm847_vm4 = vcmp.ge.s32.totalorder %v817_v34, 9 }
  0x32   :  { %708 = vmatpush.bf16.msrb.mxu0 %v1494_v2  ;;  %663 = vmatmul.bf16.gmra.mxu1 %v225_v5 }
  0x33   :  { %726 = vmatpush.bf16.msrb.mxu1 %v1502_v3  ;;  %645 = vmatmul.bf16.gmra.mxu0 %v224_v4 }
  0x34   :  { %681 = vmatmul.bf16.gmra.mxu2 %v226_v6  ;;  %699 = vmatmul.bf16.gmra.mxu3 %v227_v7 }
  0x35   :  { %744 = vmatpush.bf16.msrb.mxu2 %v1510_v8  ;;  %762 = vmatpush.bf16.msrb.mxu3 %v1518_v9 }
  0x36   :  { %709 = vmatpush.bf16.msrb.mxu0 %v1493_v10 }
  0x37   :  { %727 = vmatpush.bf16.msrb.mxu1 %v1501_v11 }
  0x39   :  { %745 = vmatpush.bf16.msrb.mxu2 %v1509_v12  ;;  %763 = vmatpush.bf16.msrb.mxu3 %v1517_v13 }
  0x3a   :  { %710 = vmatpush.bf16.msrb.mxu0 %v1492_v14 }
  0x3b   :  { %728 = vmatpush.bf16.msrb.mxu1 %v1500_v15 }
  0x3d   :  { %746 = vmatpush.bf16.msrb.mxu2 %v1508_v16  ;;  %764 = vmatpush.bf16.msrb.mxu3 %v1516_v17 }
  0x3e   :  { %711 = vmatpush.bf16.msrb.mxu0 %v1491_v18 }
  0x3f   :  { %729 = vmatpush.bf16.msrb.mxu1 %v1499_v19 }
  0x41   :  { %747 = vmatpush.bf16.msrb.mxu2 %v1507_v20  ;;  %765 = vmatpush.bf16.msrb.mxu3 %v1515_v21 }
  0x42   :  { %730 = vmatmul.bf16.vlgmr.msrb.gmra.mxu1 %v1141_v31 }
  0x43   :  { %712 = vmatmul.bf16.vlgmr.msrb.gmra.mxu0 %v1137_v30  ;;  %965 = vmatpush.bf16.msra.mxu1 %v1530_v44 }
  0x44   :  { %748 = vmatmul.bf16.vlgmr.msrb.gmra.mxu2 %v1145_v32  ;;  %766 = vmatmul.bf16.vlgmr.msrb.gmra.mxu3 %v1149_v33 }
  0x45   :  { %1531 = vmatpush.bf16.msra.mxu3 %v1530_v44 }
  0x47   :  { %966 = vmatpush.bf16.msra.mxu1 %v1529_v45 }
  0x49   :  { %1532 = vmatpush.bf16.msra.mxu3 %v1529_v45  ;;  %v1571_v45 = vmov -inf  }
  0x4b   :  { %967 = vmatpush.bf16.msra.mxu1 %v1528_v48 }
  0x4d   :  { %1533 = vmatpush.bf16.msra.mxu3 %v1528_v48 }
  0x4f   :  { %968 = vmatpush.bf16.msra.mxu1 %v1527_v49 }
  0x51   :  { %1534 = vmatpush.bf16.msra.mxu3 %v1527_v49  ;;  %v818_v49 = vadd.s32 16, %v816_v27 }
  0x52   :  { %735 = vmatmul.bf16.gmra.mxu1 %v229_v41 }
  0x53   :  { %717 = vmatmul.bf16.gmra.mxu0 %v228_v40  ;;  %969 = vmatpush.bf16.msra.mxu1 %v1526_v54  ;;  %vm851_vm5 = vcmp.lt.s32.totalorder %v818_v49, 18 }
  0x54   :  { %753 = vmatmul.bf16.gmra.mxu2 %v230_v42  ;;  %771 = vmatmul.bf16.gmra.mxu3 %v231_v43 }
  0x55   :  { %1535 = vmatpush.bf16.msra.mxu3 %v1526_v54 }
  0x57   :  { %970 = vmatpush.bf16.msra.mxu1 %v1525_v55 }
  0x59   :  { %1536 = vmatpush.bf16.msra.mxu3 %v1525_v55 }
  0x5b   :  { %971 = vmatpush.bf16.msra.mxu1 %v1524_v60 }
  0x5d   :  { %1537 = vmatpush.bf16.msra.mxu3 %v1524_v60 }
  0x5f   :  { %972 = vmatpush.bf16.msra.mxu1 %v1523_v62 }
  0x61   :  { %1538 = vmatpush.bf16.msra.mxu3 %v1523_v62 }
  0x9f   :  { %v659_v47 = vpop.f32.mrf.mxu1 }
  0xa0   :  { %v641_v46 = vpop.f32.mrf.mxu0 }
  0xa1   :  { %v642_v63 = vadd.f32 %v1541_v61, %v641_v46  ;;  %v837_v46 = vsel %vm790_vm1, -1e+30, %v1571_v45 }
  0xa3   :  { %v660_v4 = vadd.f32 %v659_v47, %v642_v63 }
  0xa7   :  { %v677_v50 = vpop.f32.mrf.mxu2  ;;  %v695_v51 = vpop.f32.mrf.mxu3 }
  0xa8   :  { %v643_v52 = vpop.f32.mrf.mxu0  ;;  %v661_v53 = vpop.f32.mrf.mxu1  ;;  %v678_v5 = vadd.f32 %v677_v50, %v660_v4 }
  0xa9   :  { %v644_v6 = vadd.f32 %v1541_v61, %v643_v52 }
  0xaa   :  { %v696_v11 = vadd.f32 %v695_v51, %v678_v5  ;;  %v1918_v5 = vld [vmem:[%s2009_s8] sm:$0x3] }
  0xab   :  { %v662_v12 = vadd.f32 %v661_v53, %v644_v6 }
  0xaf   :  { %v679_v56 = vpop.f32.mrf.mxu2  ;;  %v697_v57 = vpop.f32.mrf.mxu3 }
  0xb0   :  { %v646_v58 = vpop.f32.mrf.mxu0  ;;  %v664_v59 = vpop.f32.mrf.mxu1  ;;  %v680_v13 = vadd.f32 %v679_v56, %v662_v12 }
  0xb1   :  { %v647_v14 = vadd.f32 %v1541_v61, %v646_v58 }
  0xb2   :  { %v698_v18 = vadd.f32 %v697_v57, %v680_v13 }
  0xb3   :  { %v665_v19 = vadd.f32 %v664_v59, %v647_v14 }
  0xb7   :  { %v682_v0 = vpop.f32.mrf.mxu2  ;;  %v700_v1 = vpop.f32.mrf.mxu3 }
  0xb8   :  { %v648_v2 = vpop.f32.mrf.mxu0  ;;  %v666_v3 = vpop.f32.mrf.mxu1  ;;  %v683_v26 = vadd.f32 %v682_v0, %v665_v19 }
  0xba   :  { %v701_v32 = vadd.f32 %v700_v1, %v683_v26 }
  0xbf   :  { %v684_v7 = vpop.f32.mrf.mxu2  ;;  %v702_v8 = vpop.f32.mrf.mxu3 }
  0xc0   :  { %v713_v9 = vpop.f32.mrf.mxu0  ;;  %v731_v10 = vpop.f32.mrf.mxu1 }
  0xc1   :  { %v714_v15 = vadd.f32 %v713_v9, %v696_v11 }
  0xc3   :  { %v732_v20 = vadd.f32 %v731_v10, %v714_v15 }
  0xc7   :  { %v749_v16 = vpop.f32.mrf.mxu2  ;;  %v767_v17 = vpop.f32.mrf.mxu3 }
  0xc8   :  { %v715_v21 = vpop.f32.mrf.mxu0  ;;  %v733_v22 = vpop.f32.mrf.mxu1  ;;  %v750_v24 = vadd.f32 %v749_v16, %v732_v20 }
  0xc9   :  { %v716_v25 = vadd.f32 %v715_v21, %v698_v18  ;;  %v1440_v21 = vld [vmem:[%s2008_s7 + $0x18] sm:$0xff] }
  0xca   :  { %v768_v28 = vadd.f32 %v767_v17, %v750_v24  ;;  %v1542_v17 = vld [vmem:[%s2007_s6] ss:$0 sm:$0xff] }
  0xcb   :  { %v734_v29 = vadd.f32 %v733_v22, %v716_v25  ;;  %v1003_v22 = vld [vmem:[%s2008_s7] sm:$0xff] }
  0xcc   :  { %v779_v37 = vmul.f32 0.2, %v768_v28  ;;  %vm776_vm0 = vcmp.ge.f32.partialorder %v768_v28, 0.0 }
  0xce   :  { %v782_v41 = vsel %vm776_vm0, %v768_v28, %v779_v37  ;;  %vm893_vm0 = vcmask 9216  }
  0xcf   :  { %v751_v30 = vpop.f32.mrf.mxu2  ;;  %v769_v31 = vpop.f32.mrf.mxu3 }
  0xd0   :  { %v752_v33 = vadd.f32 %v751_v30, %v734_v29  ;;  %v718_v35 = vpop.f32.mrf.mxu0  ;;  %v736_v36 = vpop.f32.mrf.mxu1  ;;  %v1444_v29 = vld [vmem:[%s2008_s7 + $0x38] sm:$0xff]  ;;  %v1441_v30 = vld [vmem:[%s2008_s7 + $0x20] sm:$0xff] }
  0xd1   :  { %v719_v39 = vadd.f32 %v718_v35, %v701_v32 }
  0xd2   :  { %v770_v38 = vadd.f32 %v769_v31, %v752_v33  ;;  %v1004_v31 = vld [vmem:[%s2008_s7 + $0x8] sm:$0xff] }
  0xd3   :  { %v737_v43 = vadd.f32 %v736_v36, %v719_v39  ;;  %v1448_v39 = vld [vmem:[%s2008_s7 + $0x58] sm:$0x3] }
  0xd4   :  { %vm777_vm2 = vcmp.ge.f32.partialorder %v770_v38, 0.0  ;;  %v780_v40 = vmul.f32 0.2, %v770_v38 }
  0xd6   :  { %v783_v42 = vsel %vm777_vm2, %v770_v38, %v780_v40  ;;  %v1005_v38 = vld [vmem:[%s2008_s7 + $0x10] sm:$0x3] }
  0xd7   :  { %v835_v44 = vsel %vm823_vm3, %v783_v42, -1e+30  ;;  %v754_v47 = vpop.f32.mrf.mxu2  ;;  %v772_v48 = vpop.f32.mrf.mxu3  ;;  %v895_v50 = vpack.c.bf16 %v783_v42, %v782_v41  ;;  %v862_v57 = vsel %vm847_vm4, %v783_v42, -1e+30 }
  0xd8   :  { %v838_v51 = vmax.f32 %v782_v41, %v835_v44  ;;  %v755_v52 = vadd.f32 %v754_v47, %v737_v43  ;;  %v720_v53 = vpop.f32.mrf.mxu0  ;;  %v738_v54 = vpop.f32.mrf.mxu1  ;;  %v865_v62 = vmax.f32 %v862_v57, -1e+30  ;;  %v1543_v57 = vld [vmem:[%s2005_s4] ss:$0 sm:$0xff] }
  0xd9   :  { %973 = vmatmul.bf16.vlgmr.msra.gmra.mxu1 %v895_v50  ;;  %v1442_v50 = vld [vmem:[%s2008_s7 + $0x28] sm:$0x3]  ;;  %v1443_v53 = vld [vmem:[%s2008_s7 + $0x30] sm:$0xff] }
  0xda   :  { %v839_v55 = vmax.f32 %v838_v51, %v837_v46  ;;  %v773_v56 = vadd.f32 %v772_v48, %v755_v52  ;;  %v1446_v52 = vld [vmem:[%s2008_s7 + $0x48] sm:$0xff] }
  0xdc   :  { %vm778_vm6 = vcmp.ge.f32.partialorder %v773_v56, 0.0  ;;  %v781_v58 = vmul.f32 0.2, %v773_v56  ;;  %v840_v59 = vrot.slane %v839_v55, 4 }
  0xde   :  { %v784_v60 = vsel %vm778_vm6, %v773_v56, %v781_v58  ;;  %v841_v61 = vmax.f32 %v839_v55, %v840_v59  ;;  %v1447_v59 = vld [vmem:[%s2008_s7 + $0x50] sm:$0xff] }
  0xdf   :  { %v863_v63 = vsel %vm851_vm5, %v784_v60, -1e+30  ;;  %v896_v0 = vpack.c.bf16 %v784_v60, %v784_v60  ;;  %v756_v1 = vpop.f32.mrf.mxu2  ;;  %v774_v2 = vpop.f32.mrf.mxu3  ;;  %1406 = vmatpush.msk.msra.mxu0 %vm790_vm1, %v784_v60 }
  0xe0   :  { %v864_v3 = vsel %vm790_vm1, %v863_v63, -inf  ;;  %v842_v6 = vrot.slane %v841_v61, 2 }
  0xe1   :  { %v866_v4 = vmax.f32 %v865_v62, %v864_v3  ;;  %808 = vmatpush.msra.mxu0 %v783_v42  ;;  %978 = vmatmul.bf16.vlgmr.msra.gmra.mxu3 %v896_v0  ;;  %v1544_v62 = vld [vmem:[%s2004_s3] ss:$0 sm:$0xff] }
  0xe2   :  { %v843_v9 = vmax.f32 %v841_v61, %v842_v6 }
  0xe3   :  { %v867_v7 = vrot.slane %v866_v4, 4  ;;  %809 = vmatpush.msra.mxu0 %v782_v41  ;;  %v1445_v41 = vld [vmem:[%s2008_s7 + $0x40] sm:$0x3]  ;;  %s1572_s7 = smov [#allocation2]  }
  0xe4   :  { %1407 = vmatmul.msk.f32.vlgmr.msra.gmra.mxu0 %vm786_vm7, %v1918_v5  ;;  %v844_v11 = vrot.slane %v843_v9, 1  ;;  %s1099_s14 = sshll.u32 %s1572_s7, 4  ;;  %s1100_s14 = int_to_ptr.vmem [resolvable:$true] %s1099_s14 }
  0xe5   :  { %v868_v8 = vmax.f32 %v866_v4, %v867_v7 }
  0xe6   :  { %v845_v14 = vmax.f32 %v843_v9, %v844_v11 }
  0xe7   :  { %v869_v10 = vrot.slane %v868_v8, 2 }
  0xe9   :  { %v870_v12 = vmax.f32 %v868_v8, %v869_v10 }
  0xeb   :  { %v871_v13 = vrot.slane %v870_v12, 1 }
  0xed   :  { %v872_v15 = vmax.f32 %v870_v12, %v871_v13 }
  0xef   :  { %v874_v16 = vsel %vm873_vm8, %v845_v14, %v872_v15 }
  0xf0   :  { %v887_v60 = vmul.f32 %v1543_v57, %v874_v16 }
  0xf2   :  { %v888_v0 = vsel %vm790_vm1, %v887_v60, 0.0 }
 0x156   :  { %v974_v18 = vpop.f32.mrf.mxu1 }
 0x157   :  { %v975_v19 = vadd.f32 %v1542_v17, %v974_v18 }
 0x159   :  { %vm983_vm9 = vcmp.ge.f32.partialorder %v975_v19, 0.0  ;;  %v986_v20 = vmul.f32 0.2, %v975_v19 }
 0x15b   :  { %v989_v23 = vsel %vm983_vm9, %v975_v19, %v986_v20 }
 0x15c   :  { %v1020_v24 = vmul.f32 %v1440_v21, %v989_v23  ;;  %v1006_v25 = vmul.f32 %v1003_v22, %v989_v23  ;;  %v1048_v54 = vmul.f32 %v1446_v52, %v989_v23  ;;  %v1034_v56 = vmul.f32 %v1443_v53, %v989_v23 }
 0x15e   :  { %v976_v26 = vpop.f32.mrf.mxu1  ;;  %1023 = vadd.xlane.f32.xlu2 %v1020_v24  ;;  %1009 = vadd.xlane.f32.xlu1 %v1006_v25 }
 0x15f   :  { %v977_v27 = vadd.f32 %v1542_v17, %v976_v26 }
 0x161   :  { %vm984_vm10 = vcmp.ge.f32.partialorder %v977_v27, 0.0  ;;  %v987_v28 = vmul.f32 0.2, %v977_v27  ;;  %v811_v58 = vpop.f32.mrf.mxu0 }
 0x162   :  { %v814_v61 = vmul.f32 0.11111111, %v811_v58 }
 0x163   :  { %v990_v32 = vsel %vm984_vm10, %v977_v27, %v987_v28 }
 0x164   :  { %v979_v33 = vpop.f32.mrf.mxu3  ;;  %v1035_v34 = vmul.f32 %v1444_v29, %v990_v32  ;;  %v1021_v35 = vmul.f32 %v1441_v30, %v990_v32  ;;  %v1007_v36 = vmul.f32 %v1004_v31, %v990_v32  ;;  %v1049_v63 = vmul.f32 %v1447_v59, %v990_v32 }
 0x165   :  { %v980_v37 = vadd.f32 %v1542_v17, %v979_v33  ;;  %v879_v1 = vmul.f32 %v1544_v62, %v814_v61 }
 0x166   :  { %1039 = vadd.xlane.f32.xlu0 %v1035_v34  ;;  %1025 = vadd.xlane.f32.xlu2 %v1021_v35 }
 0x167   :  { %vm985_vm11 = vcmp.ge.f32.partialorder %v980_v37, 0.0  ;;  %v988_v40 = vmul.f32 0.2, %v980_v37  ;;  %1011 = vadd.xlane.f32.xlu1 %v1007_v36  ;;  %v880_v2 = vsel %vm790_vm1, %v879_v1, 0.0 }
 0x169   :  { %v991_v42 = vsel %vm985_vm11, %v980_v37, %v988_v40 }
 0x16a   :  { %v1008_v43 = vmul.f32 %v1005_v38, %v991_v42  ;;  %v1050_v44 = vmul.f32 %v1448_v39, %v991_v42  ;;  %v1036_v45 = vmul.f32 %v1445_v41, %v991_v42  ;;  %v1022_v51 = vmul.f32 %v1442_v50, %v991_v42 }
 0x16b   :  { %v996_v3 = vsel %vm790_vm1, %v991_v42, 0.0 }
 0x16c   :  { %v981_v46 = vpop.f32.mrf.mxu3  ;;  %v1013_v47 = vsel %vm790_vm1, %v1008_v43, 0.0  ;;  %v1055_v48 = vsel %vm790_vm1, %v1050_v44, 0.0  ;;  %v1041_v49 = vsel %vm790_vm1, %v1036_v45, 0.0  ;;  %v1027_v55 = vsel %vm790_vm1, %v1022_v51, 0.0 }
 0x16e   :  { %1014 = vadd.xlane.f32.xlu0 %v1013_v47  ;;  %1056 = vadd.xlane.f32.xlu2 %v1055_v48 }
 0x16f   :  { %1042 = vadd.xlane.f32.xlu1 %v1041_v49 }
 0x176   :  { %1028 = vadd.xlane.f32.xlu0 %v1027_v55  ;;  %1051 = vadd.xlane.f32.xlu2 %v1048_v54 }
 0x177   :  { %1037 = vadd.xlane.f32.xlu1 %v1034_v56 }
 0x17e   :  { %1053 = vadd.xlane.f32.xlu0 %v1049_v63  ;;  %992 = vadd.xlane.f32.xlu2 %v989_v23 }
 0x17f   :  { %889 = vadd.xlane.f32.xlu1 %v888_v0 }
 0x186   :  { %881 = vadd.xlane.f32.xlu0 %v880_v2 }
 0x187   :  { %997 = vadd.xlane.f32.xlu1 %v996_v3 }
 0x18e   :  { %994 = vadd.xlane.f32.xlu0 %v990_v32 }
 0x1d1   :  { %v1024_v4 = vpop.xlane.xlu2 %1023  ;;  %v1010_v6 = vpop.xlane.xlu1 %1009 }
 0x1d2   :  { %v1058_v20 = vsel %vm891_vm12, %v1010_v6, %v1024_v4 }
 0x1d9   :  { %v1040_v7 = vpop.xlane.xlu0 %1039  ;;  %v1026_v8 = vpop.xlane.xlu2 %1025 }
 0x1da   :  { %v1012_v9 = vpop.xlane.xlu1 %1011 }
 0x1db   :  { %v1059_v19 = vsel %vm891_vm12, %v1012_v9, %v1026_v8 }
 0x1dc   :  { %v1063_v24 = vsel %vm1061_vm14, %v1059_v19, %v1040_v7 }
 0x1e1   :  { %v1015_v10 = vpop.xlane.xlu0 %1014  ;;  %v1057_v11 = vpop.xlane.xlu2 %1056 }
 0x1e2   :  { %v1043_v12 = vpop.xlane.xlu1 %1042 }
 0x1e9   :  { %v1029_v13 = vpop.xlane.xlu0 %1028  ;;  %v1052_v14 = vpop.xlane.xlu2 %1051 }
 0x1ea   :  { %v1060_v15 = vsel %vm891_vm12, %v1015_v10, %v1029_v13  ;;  %v1038_v16 = vpop.xlane.xlu1 %1037 }
 0x1eb   :  { %v1064_v17 = vsel %vm1061_vm14, %v1060_v15, %v1043_v12  ;;  %v1062_v21 = vsel %vm1061_vm14, %v1058_v20, %v1038_v16 }
 0x1ec   :  { %v1068_v18 = vsel %vm1065_vm13, %v1064_v17, %v1057_v11  ;;  %v1066_v27 = vsel %vm1065_vm13, %v1062_v21, %v1052_v14 }
 0x1ed   :  { %1449 = vmatpush.msk.msra.mxu2 %vm790_vm1, %v1068_v18  ;;  %vm1092_vm1 = vcmask 25600  }
 0x1f1   :  { %v1054_v22 = vpop.xlane.xlu0 %1053  ;;  %v993_v23 = vpop.xlane.xlu2 %992 }
 0x1f2   :  { %999 = vst.msk [vmem:[%s2011_s10] sm:$0xff] %vm891_vm12, %v993_v23  ;;  %v890_v25 = vpop.xlane.xlu1 %889  ;;  %v1067_v26 = vsel %vm1065_vm13, %v1063_v24, %v1054_v22 }
 0x1f3   :  { %1086 = vmatpush.msra.mxu2 %v1067_v26 }
 0x1f5   :  { %1087 = vmatpush.msra.mxu2 %v1066_v27 }
 0x1f6   :  { %1450 = vmatmul.msk.f32.vlgmr.msra.gmra.mxu2 %vm786_vm7, %v1918_v5 }
 0x1f9   :  { %v882_v28 = vpop.xlane.xlu0 %881 }
 0x1fa   :  { %v998_v29 = vpop.xlane.xlu1 %997  ;;  %v892_v30 = vsel %vm891_vm12, %v882_v28, %v890_v25 }
 0x1fb   :  { %1002 = vst.msk [vmem:[%s2011_s10 + $0x10] sm:$0x3] %vm1001_vm15, %v998_v29 }
 0x1fc   :  { %894 = vst.msk [vmem:[#allocation2] sm:$0x3] %vm893_vm0, %v892_v30 }
 0x1fd   :  { %1104 = dma.vmem_to_hbm [thread:$0]  %s1100_s14, 32, %s1102_s16, [#allocation3]  }
 0x201   :  { %v995_v5 = vpop.xlane.xlu0 %994 }
 0x202   :  { %1000 = vst.msk [vmem:[%s2011_s10 + $0x8] sm:$0xff] %vm891_vm12, %v995_v5 }
 0x279   :  { %v1089_v31 = vpop.f32.mrf.mxu2 }
 0x27a   :  { %1093 = vst.msk [vmem:[%s2012_s11] sm:$0x3] %vm1092_vm1, %v1089_v31 }
 0x27b   :  { %1569 = dma.done.wait [#allocation3], 32  }
 0x27c   :  { %1570 = vsyncadd [#allocation3], 4294967264 }
 0x27d   :  { %1117 = vsyncpa [#allocation3], 1 }

</bundles_post_ra>
